<compile_context>
chip_gen: v7x
topology: tpu7x:2x2x1
jax: 0.10.0
libtpu: 0.0.40
codegen_flags: <defaults>
</compile_context>

<pallas_src>
import functools

import jax
import jax.numpy as jnp
from jax import lax
from jax.experimental import pallas as pl
from jax.experimental.pallas import tpu as pltpu


# ----------------------- bidirectional-LSTM encoder --------------------------
# One pallas_call; grid over time; both directions fused via a block-diagonal
# recurrence matmul. Gate column layout: [i_f i_b | f_f f_b | g_f g_b | o_f o_b],
# hidden/cell scratch layout: (Np, 2H) = [fwd | bwd].

def _bilstm_kernel(embf_ref, embb_ref, wihf_ref, wihb_ref, whh_ref, b_ref,
                   outf_ref, outb_ref, hN_ref, cN_ref,
                   h_sc, c_sc, *, hidden_size):
    H = hidden_size
    H2 = 2 * H
    t = pl.program_id(0)

    @pl.when(t == 0)
    def _():
        h_sc[...] = jnp.zeros_like(h_sc)
        c_sc[...] = jnp.zeros_like(c_sc)

    # fwd direction consumes emb[t]; bwd direction consumes emb[S-1-t] (index_map).
    gates = (jnp.dot(embf_ref[0].astype(jnp.bfloat16), wihf_ref[...],
                     preferred_element_type=jnp.float32)
             + jnp.dot(embb_ref[0].astype(jnp.bfloat16), wihb_ref[...],
                       preferred_element_type=jnp.float32)
             + jnp.dot(h_sc[...].astype(jnp.bfloat16), whh_ref[...],
                       preferred_element_type=jnp.float32)
             + b_ref[...])                                           # (Np, 8H)
    i = jax.nn.sigmoid(gates[:, 0:H2])
    f = jax.nn.sigmoid(gates[:, H2:2 * H2])
    g = jnp.tanh(gates[:, 2 * H2:3 * H2])
    o = jax.nn.sigmoid(gates[:, 3 * H2:4 * H2])
    c_new = f * c_sc[...] + i * g
    h_new = o * jnp.tanh(c_new)
    h_sc[...] = h_new
    c_sc[...] = c_new

    # fwd state goes to original time t; bwd state goes to original time S-1-t
    # (handled by the output index_map), so no wrapper reverse/concat is needed.
    outf_ref[0] = h_new[:, :H]
    outb_ref[0] = h_new[:, H:]

    @pl.when(t == pl.num_programs(0) - 1)
    def _():
        hN_ref[...] = h_new       # (Np, 2H) = [fwd final | bwd final]
        cN_ref[...] = c_new


def bilstm_encoder(emb_src, wih_f, wih_b, whh_bd, b_packed, *, hidden_size):
    S, Np, E = emb_src.shape
    H = hidden_size
    G = 8 * H
    kern = functools.partial(_bilstm_kernel, hidden_size=H)
    return pl.pallas_call(
        kern,
        out_shape=(
            jax.ShapeDtypeStruct((S, Np, H), jnp.float32),   # fwd states (orig time)
            jax.ShapeDtypeStruct((S, Np, H), jnp.float32),   # bwd states (orig time)
            jax.ShapeDtypeStruct((Np, 2 * H), jnp.float32),  # final h [fwd|bwd]
            jax.ShapeDtypeStruct((Np, 2 * H), jnp.float32),  # final c [fwd|bwd]
        ),
        grid_spec=pltpu.PrefetchScalarGridSpec(
            num_scalar_prefetch=0,
            grid=(S,),
            in_specs=[
                pl.BlockSpec((1, Np, E), lambda t: (t, 0, 0)),            # emb for fwd
                pl.BlockSpec((1, Np, E), lambda t: (S - 1 - t, 0, 0)),    # emb for bwd
                pl.BlockSpec((E, G), lambda t: (0, 0)),                   # W_ih fwd (bf16)
                pl.BlockSpec((E, G), lambda t: (0, 0)),                   # W_ih bwd (bf16)
                pl.BlockSpec((2 * H, G), lambda t: (0, 0)),               # W_hh blockdiag (bf16)
                pl.BlockSpec((1, G), lambda t: (0, 0)),                   # bias
            ],
            out_specs=(
                pl.BlockSpec((1, Np, H), lambda t: (t, 0, 0)),
                pl.BlockSpec((1, Np, H), lambda t: (S - 1 - t, 0, 0)),
                pl.BlockSpec((Np, 2 * H), lambda t: (0, 0)),
                pl.BlockSpec((Np, 2 * H), lambda t: (0, 0)),
            ),
            scratch_shapes=[
                pltpu.VMEM((Np, 2 * H), jnp.float32),
                pltpu.VMEM((Np, 2 * H), jnp.float32),
            ],
        ),
        compiler_params=pltpu.CompilerParams(dimension_semantics=("arbitrary",)),
    )(emb_src, emb_src, wih_f, wih_b, whh_bd, b_packed)


# ----------------------- fused attention decoder ------------------------------
# One pallas_call; grid over target timesteps 1..T-1; per step:
# select input embedding (teacher-forced vs previous argmax), additive attention
# with exact softmax over S (encoder-side energy hoisted to t==0), LSTM cell,
# fc logits (lane-dense), argmax feedback. hidden0/cell0 computed at t==0.

def _decoder_kernel(tf_ref,
                    emb_tgt_ref, encf_ref, encb_ref,
                    hN_ref, cN_ref, fchw_ref, fchb_ref, fccw_ref, fccb_ref,
                    wh_ref, wencf_ref, wencb_ref, be_ref,
                    wctxf_ref, wctxb_ref, wemb_ref, whh_ref, bdec_ref,
                    fcw_ref, fcb_ref, embdec_ref,
                    out_ref,
                    h_sc, c_sc, embx_sc, eenc_sc,
                    *, hidden_size, vocab, vocab_pad):
    H = hidden_size
    V = vocab
    Vp = vocab_pad
    t = pl.program_id(0)

    @pl.when(t == 0)
    def _():
        # fold fc_hidden / fc_cell projections into the kernel (saves 2 launches)
        h_sc[...] = (jnp.dot(hN_ref[...].astype(jnp.bfloat16), fchw_ref[...],
                             preferred_element_type=jnp.float32) + fchb_ref[...])
        c_sc[...] = (jnp.dot(cN_ref[...].astype(jnp.bfloat16), fccw_ref[...],
                             preferred_element_type=jnp.float32) + fccb_ref[...])
        embx_sc[...] = jnp.zeros_like(embx_sc)
        # loop-invariant encoder-side energy term, hoisted out of the time loop
        eenc_sc[...] = (jnp.sum(encf_ref[...] * wencf_ref[...][None, :, :], axis=-1)
                        + jnp.sum(encb_ref[...] * wencb_ref[...][None, :, :], axis=-1))

    # input token embedding: target[t] if (first step or teacher forcing) else prev argmax
    use_tf = jnp.logical_or(t == 0, tf_ref[t] != 0).astype(jnp.float32)
    emb_x = use_tf * emb_tgt_ref[0] + (1.0 - use_tf) * embx_sc[...]       # (Np, E)

    # ---- attention over encoder states (softmax along S, torch Softmax(dim=0)) ----
    h = h_sc[...]                                                          # (Np, H)
    e_h = jnp.sum(h * wh_ref[...], axis=-1)                                # (Np,)
    energy = jax.nn.relu(eenc_sc[...] + e_h[None, :] + be_ref[...])        # (S, Np)
    m = jnp.max(energy, axis=0, keepdims=True)
    p = jnp.exp(energy - m)
    attn = p / jnp.sum(p, axis=0, keepdims=True)                           # exact divide
    ctx_f = jnp.sum(attn[:, :, None] * encf_ref[...], axis=0)              # (Np, H)
    ctx_b = jnp.sum(attn[:, :, None] * encb_ref[...], axis=0)              # (Np, H)

    # ---- LSTM cell; rnn_input = [ctx_f ; ctx_b ; emb_x] realized as split dots ----
    gates = (jnp.dot(ctx_f.astype(jnp.bfloat16), wctxf_ref[...],
                     preferred_element_type=jnp.float32)
             + jnp.dot(ctx_b.astype(jnp.bfloat16), wctxb_ref[...],
                       preferred_element_type=jnp.float32)
             + jnp.dot(emb_x.astype(jnp.bfloat16), wemb_ref[...],
                       preferred_element_type=jnp.float32)
             + jnp.dot(h.astype(jnp.bfloat16), whh_ref[...],
                       preferred_element_type=jnp.float32)
             + bdec_ref[...])                                              # (Np, 4H)
    ig = jax.nn.sigmoid(gates[:, 0:H])
    fg = jax.nn.sigmoid(gates[:, H:2 * H])
    gg = jnp.tanh(gates[:, 2 * H:3 * H])
    og = jax.nn.sigmoid(gates[:, 3 * H:4 * H])
    c_new = fg * c_sc[...] + ig * gg
    h_new = og * jnp.tanh(c_new)
    h_sc[...] = h_new
    c_sc[...] = c_new

    # ---- output projection, lane-dense (V padded to Vp) ----
    logits = (jnp.dot(h_new.astype(jnp.bfloat16), fcw_ref[...],
                      preferred_element_type=jnp.float32) + fcb_ref[...])  # (Np, Vp)
    out_ref[0] = logits

    # ---- argmax feedback -> embedding of best token (one-hot @ bf16 emb table) ----
    # TODO(synk): scalar-indexed / DMA gather instead of one-hot matmul at real vocab.
    lane = lax.broadcasted_iota(jnp.int32, logits.shape, 1)
    masked = jnp.where(lane < V, logits, -jnp.inf)
    mx = jnp.max(masked, axis=-1, keepdims=True)
    idx = jnp.min(jnp.where(masked == mx, lane, Vp), axis=-1, keepdims=True)
    onehot = (lane == idx).astype(jnp.bfloat16)                            # (Np, Vp)
    embx_sc[...] = jnp.dot(onehot, embdec_ref[...],
                           preferred_element_type=jnp.float32)             # (Np, E)


def decoder_run(tf_i32, emb_tgt, enc_f, enc_b, hN, cN,
                fchw, fchb, fccw, fccb,
                wh, wencf, wencb, be,
                wctxf, wctxb, wemb, whh, bdec,
                fcw, fcb, embdec,
                *, hidden_size, vocab, vocab_pad):
    T, Np, E = emb_tgt.shape
    S = enc_f.shape[0]
    H = hidden_size
    Vp = vocab_pad
    G = 4 * H
    kern = functools.partial(_decoder_kernel, hidden_size=H, vocab=vocab,
                             vocab_pad=Vp)
    return pl.pallas_call(
        kern,
        out_shape=jax.ShapeDtypeStruct((T - 1, Np, Vp), jnp.float32),
        grid_spec=pltpu.PrefetchScalarGridSpec(
            num_scalar_prefetch=1,
            grid=(T - 1,),
            in_specs=[
                pl.BlockSpec((1, Np, E), lambda t, tf: (t, 0, 0)),        # emb(target[t])
                pl.BlockSpec((S, Np, H), lambda t, tf: (0, 0, 0)),        # enc fwd states
                pl.BlockSpec((S, Np, H), lambda t, tf: (0, 0, 0)),        # enc bwd states
                pl.BlockSpec((Np, 2 * H), lambda t, tf: (0, 0)),          # encoder final h
                pl.BlockSpec((Np, 2 * H), lambda t, tf: (0, 0)),          # encoder final c
                pl.BlockSpec((2 * H, H), lambda t, tf: (0, 0)),           # fc_hidden W (bf16)
                pl.BlockSpec((1, H), lambda t, tf: (0, 0)),               # fc_hidden b
                pl.BlockSpec((2 * H, H), lambda t, tf: (0, 0)),           # fc_cell W (bf16)
                pl.BlockSpec((1, H), lambda t, tf: (0, 0)),               # fc_cell b
                pl.BlockSpec((1, H), lambda t, tf: (0, 0)),               # energy w (hidden)
                pl.BlockSpec((1, H), lambda t, tf: (0, 0)),               # energy w (enc fwd)
                pl.BlockSpec((1, H), lambda t, tf: (0, 0)),               # energy w (enc bwd)
                pl.BlockSpec((1, 1), lambda t, tf: (0, 0)),               # energy bias
                pl.BlockSpec((H, G), lambda t, tf: (0, 0)),               # W_ih ctx fwd (bf16)
                pl.BlockSpec((H, G), lambda t, tf: (0, 0)),               # W_ih ctx bwd (bf16)
                pl.BlockSpec((E, G), lambda t, tf: (0, 0)),               # W_ih emb (bf16)
                pl.BlockSpec((H, G), lambda t, tf: (0, 0)),               # W_hh (bf16)
                pl.BlockSpec((1, G), lambda t, tf: (0, 0)),               # b
                pl.BlockSpec((H, Vp), lambda t, tf: (0, 0)),              # fc W (bf16, padded)
                pl.BlockSpec((1, Vp), lambda t, tf: (0, 0)),              # fc b (padded)
                pl.BlockSpec((Vp, E), lambda t, tf: (0, 0)),              # emb table (bf16)
            ],
            out_specs=pl.BlockSpec((1, Np, Vp), lambda t, tf: (t, 0, 0)),
            scratch_shapes=[
                pltpu.VMEM((Np, H), jnp.float32),       # hidden
                pltpu.VMEM((Np, H), jnp.float32),       # cell
                pltpu.VMEM((Np, E), jnp.float32),       # feedback embedding
                pltpu.VMEM((S, Np), jnp.float32),       # hoisted encoder energy term
            ],
        ),
        compiler_params=pltpu.CompilerParams(
            dimension_semantics=("arbitrary",),
            vmem_limit_bytes=32 * 1024 * 1024),
    )(tf_i32, emb_tgt, enc_f, enc_b, hN, cN, fchw, fchb, fccw, fccb,
      wh, wencf, wencb, be, wctxf, wctxb, wemb, whh, bdec, fcw, fcb, embdec)


# ----------------------------- model glue -------------------------------------

def init_params(key, in_vocab, out_vocab, emb, hidden):
    ks = jax.random.split(key, 12)
    s = 0.1
    p = {
        "emb_enc": jax.random.normal(ks[0], (in_vocab, emb)) * s,
        "enc_f_wih": jax.random.normal(ks[1], (emb, 4 * hidden)) * s,
        "enc_f_whh": jax.random.normal(ks[2], (hidden, 4 * hidden)) * s,
        "enc_f_b": jnp.zeros((4 * hidden,)),
        "enc_b_wih": jax.random.normal(ks[3], (emb, 4 * hidden)) * s,
        "enc_b_whh": jax.random.normal(ks[4], (hidden, 4 * hidden)) * s,
        "enc_b_b": jnp.zeros((4 * hidden,)),
        "fc_h_w": jax.random.normal(ks[5], (2 * hidden, hidden)) * s,
        "fc_h_b": jnp.zeros((hidden,)),
        "fc_c_w": jax.random.normal(ks[6], (2 * hidden, hidden)) * s,
        "fc_c_b": jnp.zeros((hidden,)),
        "emb_dec": jax.random.normal(ks[7], (out_vocab, emb)) * s,
        "energy_w": jax.random.normal(ks[8], (3 * hidden,)) * s,
        "energy_b": jnp.zeros(()),
        "dec_wih": jax.random.normal(ks[9], (2 * hidden + emb, 4 * hidden)) * s,
        "dec_whh": jax.random.normal(ks[10], (hidden, 4 * hidden)) * s,
        "dec_b": jnp.zeros((4 * hidden,)),
        "fc_w": jax.random.normal(ks[11], (hidden, out_vocab)) * s,
        "fc_b": jnp.zeros((out_vocab,)),
    }
    return jax.tree_util.tree_map(lambda v: v.astype(jnp.float32), p)


def _interleave_gates(wf, wb, hidden):
    # wf, wb: (X, 4H) with gate cols [i f g o] -> (X, 8H) cols [i_f i_b f_f f_b ...]
    x = wf.shape[0]
    wf4 = wf.reshape(x, 4, hidden)
    wb4 = wb.reshape(x, 4, hidden)
    return jnp.stack([wf4, wb4], axis=2).reshape(x, 8 * hidden)


def seq2seq_forward(params, source, target, tf_flags):
    # source: (S, N) int32 ; target: (T, N) int32 ; tf_flags: (T,) bool
    S, N = source.shape
    T = target.shape[0]
    H = params["fc_w"].shape[0]
    V = params["fc_w"].shape[1]
    E = params["emb_enc"].shape[1]
    Vp = ((V + 127) // 128) * 128            # lane-dense logits
    Np = ((N + 7) // 8) * 8                  # batch padded to 8 sublanes
    bf16 = jnp.bfloat16

    pad_n = Np - N
    src = jnp.pad(source, ((0, 0), (0, pad_n))) if pad_n else source
    tgt = jnp.pad(target, ((0, 0), (0, pad_n))) if pad_n else target

    # ---------------- Encoder (bidirectional LSTM, 1 layer) ----------------
    emb_src = params["emb_enc"][src]                                   # (S, Np, E) gather glue
    zf = jnp.zeros_like(params["enc_f_wih"])
    zb = jnp.zeros_like(params["enc_b_wih"])
    wih_f = _interleave_gates(params["enc_f_wih"], zb, H).astype(bf16)  # (E, 8H) fwd cols
    wih_b = _interleave_gates(zf, params["enc_b_wih"], H).astype(bf16)  # (E, 8H) bwd cols
    whh_bd = jnp.concatenate([
        _interleave_gates(params["enc_f_whh"], jnp.zeros_like(params["enc_f_whh"]), H),
        _interleave_gates(jnp.zeros_like(params["enc_b_whh"]), params["enc_b_whh"], H),
    ], axis=0).astype(bf16)                                             # (2H, 8H) block-diag
    b_packed = _interleave_gates(params["enc_f_b"][None, :],
                                 params["enc_b_b"][None, :], H)         # (1, 8H)

    enc_f, enc_b, hN, cN = bilstm_encoder(emb_src, wih_f, wih_b, whh_bd, b_packed,
                                          hidden_size=H)

    # ---------------- Decoder (single fused kernel over all timesteps) ------
    emb_tgt = params["emb_dec"][tgt]                                   # (T, Np, E) gather glue
    wh = params["energy_w"][:H].reshape(1, H)                          # hidden-first concat order
    wencf = params["energy_w"][H:2 * H].reshape(1, H)
    wencb = params["energy_w"][2 * H:].reshape(1, H)
    be = jnp.reshape(params["energy_b"], (1, 1)).astype(jnp.float32)
    wctxf = params["dec_wih"][:H].astype(bf16)
    wctxb = params["dec_wih"][H:2 * H].astype(bf16)
    wemb = params["dec_wih"][2 * H:].astype(bf16)
    whh_dec = params["dec_whh"].astype(bf16)
    bdec = params["dec_b"].reshape(1, 4 * H)
    fchw = params["fc_h_w"].astype(bf16)
    fchb = params["fc_h_b"].reshape(1, H)
    fccw = params["fc_c_w"].astype(bf16)
    fccb = params["fc_c_b"].reshape(1, H)
    fcw = jnp.pad(params["fc_w"], ((0, 0), (0, Vp - V))).astype(bf16)
    fcb = jnp.pad(params["fc_b"], (0, Vp - V)).reshape(1, Vp)
    embdec = jnp.pad(params["emb_dec"], ((0, Vp - V), (0, 0))).astype(bf16)   # (Vp, E)
    tf_i32 = tf_flags.astype(jnp.int32)

    dec_out = decoder_run(tf_i32, emb_tgt, enc_f, enc_b, hN, cN,
                          fchw, fchb, fccw, fccb,
                          wh, wencf, wencb, be,
                          wctxf, wctxb, wemb, whh_dec, bdec,
                          fcw, fcb, embdec,
                          hidden_size=H, vocab=V, vocab_pad=Vp)        # (T-1, Np, Vp)

    preds = dec_out[:, :N, :V]
    # outputs[0] stays zero, as in the torch reference loop
    return jnp.concatenate([jnp.zeros((1, N, V), jnp.float32), preds], axis=0)


# ----------------------------- main --------------------------------------------

if __name__ == "__main__":
    SRC_LEN, TGT_LEN, BATCH = 8, 6, 4
    EMB, HIDDEN = 16, 32
    IN_VOCAB, OUT_VOCAB = 20, 12

    key = jax.random.PRNGKey(0)
    k_par, k_src, k_tgt, k_tf = jax.random.split(key, 4)

    params = init_params(k_par, IN_VOCAB, OUT_VOCAB, EMB, HIDDEN)
    source = jax.random.randint(k_src, (SRC_LEN, BATCH), 0, IN_VOCAB, dtype=jnp.int32)
    target = jax.random.randint(k_tgt, (TGT_LEN, BATCH), 0, OUT_VOCAB, dtype=jnp.int32)
    tf_flags = jax.random.uniform(k_tf, (TGT_LEN,)) < 0.5   # deterministic teacher-forcing coins

    fwd = jax.jit(seq2seq_forward)
    out = fwd(params, source, target, tf_flags)
    jax.block_until_ready(out)

    assert out.shape == (TGT_LEN, BATCH, OUT_VOCAB)
    assert bool(jnp.all(jnp.isfinite(out)))
    print("KERNEL_OK")
</pallas_src>

<mosaic_0001>
module attributes {stable_mosaic.version = 11 : i64} {
  func.func @_bilstm_kernel(%arg0: i32, %arg1: memref<1x8x16xf32, #tpu.memory_space<vmem>>, %arg2: memref<1x8x16xf32, #tpu.memory_space<vmem>>, %arg3: memref<16x256xbf16, #tpu.memory_space<vmem>>, %arg4: memref<16x256xbf16, #tpu.memory_space<vmem>>, %arg5: memref<64x256xbf16, #tpu.memory_space<vmem>>, %arg6: memref<1x256xf32, #tpu.memory_space<vmem>>, %arg7: memref<1x8x32xf32, #tpu.memory_space<vmem>>, %arg8: memref<1x8x32xf32, #tpu.memory_space<vmem>>, %arg9: memref<8x64xf32, #tpu.memory_space<vmem>>, %arg10: memref<8x64xf32, #tpu.memory_space<vmem>>, %arg11: memref<8x64xf32, #tpu.memory_space<vmem>>, %arg12: memref<8x64xf32, #tpu.memory_space<vmem>>) attributes {dimension_semantics = [#tpu.dimension_semantics<arbitrary>], iteration_bounds = array<i64: 8>, scalar_prefetch = 0 : i64, scratch_operands = 2 : i64, tpu.core_type = #tpu.core_type<tc>, window_params = [{transform_indices = @transform_0, window_bounds = array<i64: 1, 8, 16>}, {transform_indices = @transform_1, window_bounds = array<i64: 1, 8, 16>}, {pipeline_mode = #tpu.pipeline_mode<synchronous>, transform_indices = @transform_2, window_bounds = array<i64: 16, 256>}, {pipeline_mode = #tpu.pipeline_mode<synchronous>, transform_indices = @transform_3, window_bounds = array<i64: 16, 256>}, {pipeline_mode = #tpu.pipeline_mode<synchronous>, transform_indices = @transform_4, window_bounds = array<i64: 64, 256>}, {pipeline_mode = #tpu.pipeline_mode<synchronous>, transform_indices = @transform_5, window_bounds = array<i64: 1, 256>}, {transform_indices = @transform_6, window_bounds = array<i64: 1, 8, 32>}, {transform_indices = @transform_7, window_bounds = array<i64: 1, 8, 32>}, {pipeline_mode = #tpu.pipeline_mode<synchronous>, transform_indices = @transform_8, window_bounds = array<i64: 8, 64>}, {pipeline_mode = #tpu.pipeline_mode<synchronous>, transform_indices = @transform_9, window_bounds = array<i64: 8, 64>}]} {
    %c0_i32 = arith.constant 0 : i32
    %0 = arith.cmpi eq, %arg0, %c0_i32 : i32
    %1 = arith.extui %0 : i1 to i32
    %c0_i32_0 = arith.constant 0 : i32
    %2 = arith.cmpi ne, %1, %c0_i32_0 : i32
    scf.if %2 {
      %cst_34 = arith.constant 0.000000e+00 : f32
      %61 = vector.broadcast %cst_34 : f32 to vector<8x64xf32>
      %c0_35 = arith.constant 0 : index
      %c0_36 = arith.constant 0 : index
      %62 = vector.load %arg11[%c0_35, %c0_36] : memref<8x64xf32, #tpu.memory_space<vmem>>, vector<8x64xf32>
      tpu.vector_store %arg11[%c0_35, %c0_36], %61 {strides = array<i32>} : memref<8x64xf32, #tpu.memory_space<vmem>>, vector<8x64xf32>,
      %cst_37 = arith.constant 0.000000e+00 : f32
      %63 = vector.broadcast %cst_37 : f32 to vector<8x64xf32>
      %c0_38 = arith.constant 0 : index
      %c0_39 = arith.constant 0 : index
      %64 = vector.load %arg12[%c0_38, %c0_39] : memref<8x64xf32, #tpu.memory_space<vmem>>, vector<8x64xf32>
      tpu.vector_store %arg12[%c0_38, %c0_39], %63 {strides = array<i32>} : memref<8x64xf32, #tpu.memory_space<vmem>>, vector<8x64xf32>,
    } else {
    }
    %c0 = arith.constant 0 : index
    %c0_1 = arith.constant 0 : index
    %c0_2 = arith.constant 0 : index
    %3 = vector.load %arg1[%c0, %c0_1, %c0_2] : memref<1x8x16xf32, #tpu.memory_space<vmem>>, vector<1x8x16xf32>
    %4 = vector.shape_cast %3 : vector<1x8x16xf32> to vector<8x16xf32>
    %5 = arith.truncf %4 : vector<8x16xf32> to vector<8x16xbf16>
    %c0_3 = arith.constant 0 : index
    %c0_4 = arith.constant 0 : index
    %6 = vector.load %arg3[%c0_3, %c0_4] : memref<16x256xbf16, #tpu.memory_space<vmem>>, vector<16x256xbf16>
    %cst = arith.constant dense<0.000000e+00> : vector<8x256xf32>
    %7 = tpu.matmul %5, %6, %cst {dimension_numbers = #tpu.dot_dimension_numbers<[1], [0], [0], [1], [0, 0, 1, 1], [], []>} : vector<8x16xbf16>, vector<16x256xbf16>, vector<8x256xf32> -> vector<8x256xf32>
    %c0_5 = arith.constant 0 : index
    %c0_6 = arith.constant 0 : index
    %c0_7 = arith.constant 0 : index
    %8 = vector.load %arg2[%c0_5, %c0_6, %c0_7] : memref<1x8x16xf32, #tpu.memory_space<vmem>>, vector<1x8x16xf32>
    %9 = vector.shape_cast %8 : vector<1x8x16xf32> to vector<8x16xf32>
    %10 = arith.truncf %9 : vector<8x16xf32> to vector<8x16xbf16>
    %c0_8 = arith.constant 0 : index
    %c0_9 = arith.constant 0 : index
    %11 = vector.load %arg4[%c0_8, %c0_9] : memref<16x256xbf16, #tpu.memory_space<vmem>>, vector<16x256xbf16>
    %cst_10 = arith.constant dense<0.000000e+00> : vector<8x256xf32>
    %12 = tpu.matmul %10, %11, %cst_10 {dimension_numbers = #tpu.dot_dimension_numbers<[1], [0], [0], [1], [0, 0, 1, 1], [], []>} : vector<8x16xbf16>, vector<16x256xbf16>, vector<8x256xf32> -> vector<8x256xf32>
    %13 = arith.addf %7, %12 : vector<8x256xf32>
    %c0_11 = arith.constant 0 : index
    %c0_12 = arith.constant 0 : index
    %14 = vector.load %arg11[%c0_11, %c0_12] : memref<8x64xf32, #tpu.memory_space<vmem>>, vector<8x64xf32>
    %15 = arith.truncf %14 : vector<8x64xf32> to vector<8x64xbf16>
    %c0_13 = arith.constant 0 : index
    %c0_14 = arith.constant 0 : index
    %16 = vector.load %arg5[%c0_13, %c0_14] : memref<64x256xbf16, #tpu.memory_space<vmem>>, vector<64x256xbf16>
    %cst_15 = arith.constant dense<0.000000e+00> : vector<8x256xf32>
    %17 = tpu.matmul %15, %16, %cst_15 {dimension_numbers = #tpu.dot_dimension_numbers<[1], [0], [0], [1], [0, 0, 1, 1], [], []>} : vector<8x64xbf16>, vector<64x256xbf16>, vector<8x256xf32> -> vector<8x256xf32>
    %18 = arith.addf %13, %17 : vector<8x256xf32>
    %c0_16 = arith.constant 0 : index
    %c0_17 = arith.constant 0 : index
    %19 = vector.load %arg6[%c0_16, %c0_17] : memref<1x256xf32, #tpu.memory_space<vmem>>, vector<1x256xf32>
    %20 = vector.broadcast %19 : vector<1x256xf32> to vector<8x256xf32>
    %21 = arith.addf %18, %20 : vector<8x256xf32>
    %22 = vector.extract_strided_slice %21 {offsets = [0, 0], sizes = [8, 64], strides = [1, 1]} : vector<8x256xf32> to vector<8x64xf32>
    %23 = arith.negf %22 : vector<8x64xf32>
    %24 = math.exp %23 : vector<8x64xf32>
    %cst_18 = arith.constant 1.000000e+00 : f32
    %25 = vector.broadcast %cst_18 : f32 to vector<8x64xf32>
    %26 = arith.addf %25, %24 : vector<8x64xf32>
    %27 = arith.divf %25, %26 : vector<8x64xf32>
    %28 = vector.extract_strided_slice %21 {offsets = [0, 64], sizes = [8, 64], strides = [1, 1]} : vector<8x256xf32> to vector<8x64xf32>
    %29 = arith.negf %28 : vector<8x64xf32>
    %30 = math.exp %29 : vector<8x64xf32>
    %cst_19 = arith.constant 1.000000e+00 : f32
    %31 = vector.broadcast %cst_19 : f32 to vector<8x64xf32>
    %32 = arith.addf %31, %30 : vector<8x64xf32>
    %33 = arith.divf %31, %32 : vector<8x64xf32>
    %34 = vector.extract_strided_slice %21 {offsets = [0, 128], sizes = [8, 64], strides = [1, 1]} : vector<8x256xf32> to vector<8x64xf32>
    %35 = math.tanh %34 : vector<8x64xf32>
    %36 = vector.extract_strided_slice %21 {offsets = [0, 192], sizes = [8, 64], strides = [1, 1]} : vector<8x256xf32> to vector<8x64xf32>
    %37 = arith.negf %36 : vector<8x64xf32>
    %38 = math.exp %37 : vector<8x64xf32>
    %cst_20 = arith.constant 1.000000e+00 : f32
    %39 = vector.broadcast %cst_20 : f32 to vector<8x64xf32>
    %40 = arith.addf %39, %38 : vector<8x64xf32>
    %41 = arith.divf %39, %40 : vector<8x64xf32>
    %c0_21 = arith.constant 0 : index
    %c0_22 = arith.constant 0 : index
    %42 = vector.load %arg12[%c0_21, %c0_22] : memref<8x64xf32, #tpu.memory_space<vmem>>, vector<8x64xf32>
    %43 = arith.mulf %33, %42 : vector<8x64xf32>
    %44 = arith.mulf %27, %35 : vector<8x64xf32>
    %45 = arith.addf %43, %44 : vector<8x64xf32>
    %46 = math.tanh %45 : vector<8x64xf32>
    %47 = arith.mulf %41, %46 : vector<8x64xf32>
    %c0_23 = arith.constant 0 : index
    %c0_24 = arith.constant 0 : index
    %48 = vector.load %arg11[%c0_23, %c0_24] : memref<8x64xf32, #tpu.memory_space<vmem>>, vector<8x64xf32>
    tpu.vector_store %arg11[%c0_23, %c0_24], %47 {strides = array<i32>} : memref<8x64xf32, #tpu.memory_space<vmem>>, vector<8x64xf32>,
    %c0_25 = arith.constant 0 : index
    %c0_26 = arith.constant 0 : index
    %49 = vector.load %arg12[%c0_25, %c0_26] : memref<8x64xf32, #tpu.memory_space<vmem>>, vector<8x64xf32>
    tpu.vector_store %arg12[%c0_25, %c0_26], %45 {strides = array<i32>} : memref<8x64xf32, #tpu.memory_space<vmem>>, vector<8x64xf32>,
    %50 = vector.extract_strided_slice %47 {offsets = [0, 0], sizes = [8, 32], strides = [1, 1]} : vector<8x64xf32> to vector<8x32xf32>
    %c0_27 = arith.constant 0 : index
    %c0_28 = arith.constant 0 : index
    %c0_29 = arith.constant 0 : index
    %51 = vector.load %arg7[%c0_27, %c0_28, %c0_29] : memref<1x8x32xf32, #tpu.memory_space<vmem>>, vector<1x8x32xf32>
    %52 = vector.shape_cast %51 : vector<1x8x32xf32> to vector<8x32xf32>
    %53 = vector.shape_cast %50 : vector<8x32xf32> to vector<1x8x32xf32>
    tpu.vector_store %arg7[%c0_27, %c0_28, %c0_29], %53 {strides = array<i32>} : memref<1x8x32xf32, #tpu.memory_space<vmem>>, vector<1x8x32xf32>,
    %54 = vector.extract_strided_slice %47 {offsets = [0, 32], sizes = [8, 32], strides = [1, 1]} : vector<8x64xf32> to vector<8x32xf32>
    %c0_30 = arith.constant 0 : index
    %c0_31 = arith.constant 0 : index
    %c0_32 = arith.constant 0 : index
    %55 = vector.load %arg8[%c0_30, %c0_31, %c0_32] : memref<1x8x32xf32, #tpu.memory_space<vmem>>, vector<1x8x32xf32>
    %56 = vector.shape_cast %55 : vector<1x8x32xf32> to vector<8x32xf32>
    %57 = vector.shape_cast %54 : vector<8x32xf32> to vector<1x8x32xf32>
    tpu.vector_store %arg8[%c0_30, %c0_31, %c0_32], %57 {strides = array<i32>} : memref<1x8x32xf32, #tpu.memory_space<vmem>>, vector<1x8x32xf32>,
    %c7_i32 = arith.constant 7 : i32
    %58 = arith.cmpi eq, %arg0, %c7_i32 : i32
    %59 = arith.extui %58 : i1 to i32
    %c0_i32_33 = arith.constant 0 : i32
    %60 = arith.cmpi ne, %59, %c0_i32_33 : i32
    scf.if %60 {
      %c0_34 = arith.constant 0 : index
      %c0_35 = arith.constant 0 : index
      %61 = vector.load %arg9[%c0_34, %c0_35] : memref<8x64xf32, #tpu.memory_space<vmem>>, vector<8x64xf32>
      tpu.vector_store %arg9[%c0_34, %c0_35], %47 {strides = array<i32>} : memref<8x64xf32, #tpu.memory_space<vmem>>, vector<8x64xf32>,
      %c0_36 = arith.constant 0 : index
      %c0_37 = arith.constant 0 : index
      %62 = vector.load %arg10[%c0_36, %c0_37] : memref<8x64xf32, #tpu.memory_space<vmem>>, vector<8x64xf32>
      tpu.vector_store %arg10[%c0_36, %c0_37], %45 {strides = array<i32>} : memref<8x64xf32, #tpu.memory_space<vmem>>, vector<8x64xf32>,
    } else {
    }
    return
  }
  func.func @transform_0(%arg0: i32) -> (i32, i32, i32) {
    %c0_i32 = arith.constant 0 : i32
    %c0_i32_0 = arith.constant 0 : i32
    %c0_i32_1 = arith.constant 0 : i32
    return %arg0, %c0_i32, %c0_i32_0 : i32, i32, i32
  }
  func.func @transform_1(%arg0: i32) -> (i32, i32, i32) {
    %c7_i32 = arith.constant 7 : i32
    %0 = arith.subi %c7_i32, %arg0 : i32
    %c0_i32 = arith.constant 0 : i32
    %c0_i32_0 = arith.constant 0 : i32
    %c0_i32_1 = arith.constant 0 : i32
    return %0, %c0_i32, %c0_i32_0 : i32, i32, i32
  }
  func.func @transform_2(%arg0: i32) -> (i32, i32) {
    %c0_i32 = arith.constant 0 : i32
    %c0_i32_0 = arith.constant 0 : i32
    %c0_i32_1 = arith.constant 0 : i32
    return %c0_i32, %c0_i32_0 : i32, i32
  }
  func.func @transform_3(%arg0: i32) -> (i32, i32) {
    %c0_i32 = arith.constant 0 : i32
    %c0_i32_0 = arith.constant 0 : i32
    %c0_i32_1 = arith.constant 0 : i32
    return %c0_i32, %c0_i32_0 : i32, i32
  }
  func.func @transform_4(%arg0: i32) -> (i32, i32) {
    %c0_i32 = arith.constant 0 : i32
    %c0_i32_0 = arith.constant 0 : i32
    %c0_i32_1 = arith.constant 0 : i32
    return %c0_i32, %c0_i32_0 : i32, i32
  }
  func.func @transform_5(%arg0: i32) -> (i32, i32) {
    %c0_i32 = arith.constant 0 : i32
    %c0_i32_0 = arith.constant 0 : i32
    %c0_i32_1 = arith.constant 0 : i32
    return %c0_i32, %c0_i32_0 : i32, i32
  }
  func.func @transform_6(%arg0: i32) -> (i32, i32, i32) {
    %c0_i32 = arith.constant 0 : i32
    %c0_i32_0 = arith.constant 0 : i32
    %c0_i32_1 = arith.constant 0 : i32
    return %arg0, %c0_i32, %c0_i32_0 : i32, i32, i32
  }
  func.func @transform_7(%arg0: i32) -> (i32, i32, i32) {
    %c7_i32 = arith.constant 7 : i32
    %0 = arith.subi %c7_i32, %arg0 : i32
    %c0_i32 = arith.constant 0 : i32
    %c0_i32_0 = arith.constant 0 : i32
    %c0_i32_1 = arith.constant 0 : i32
    return %0, %c0_i32, %c0_i32_0 : i32, i32, i32
  }
  func.func @transform_8(%arg0: i32) -> (i32, i32) {
    %c0_i32 = arith.constant 0 : i32
    %c0_i32_0 = arith.constant 0 : i32
    %c0_i32_1 = arith.constant 0 : i32
    return %c0_i32, %c0_i32_0 : i32, i32
  }
  func.func @transform_9(%arg0: i32) -> (i32, i32) {
    %c0_i32 = arith.constant 0 : i32
    %c0_i32_0 = arith.constant 0 : i32
    %c0_i32_1 = arith.constant 0 : i32
    return %c0_i32, %c0_i32_0 : i32, i32
  }
}

module attributes {stable_mosaic.version = 11 : i64} {
  func.func @_decoder_kernel(%arg0: i32, %arg1: memref<6xi32, #tpu.memory_space<smem>>, %arg2: memref<1x8x16xf32, #tpu.memory_space<vmem>>, %arg3: memref<8x8x32xf32, #tpu.memory_space<vmem>>, %arg4: memref<8x8x32xf32, #tpu.memory_space<vmem>>, %arg5: memref<8x64xf32, #tpu.memory_space<vmem>>, %arg6: memref<8x64xf32, #tpu.memory_space<vmem>>, %arg7: memref<64x32xbf16, #tpu.memory_space<vmem>>, %arg8: memref<1x32xf32, #tpu.memory_space<vmem>>, %arg9: memref<64x32xbf16, #tpu.memory_space<vmem>>, %arg10: memref<1x32xf32, #tpu.memory_space<vmem>>, %arg11: memref<1x32xf32, #tpu.memory_space<vmem>>, %arg12: memref<1x32xf32, #tpu.memory_space<vmem>>, %arg13: memref<1x32xf32, #tpu.memory_space<vmem>>, %arg14: memref<1x1xf32, #tpu.memory_space<vmem>>, %arg15: memref<32x128xbf16, #tpu.memory_space<vmem>>, %arg16: memref<32x128xbf16, #tpu.memory_space<vmem>>, %arg17: memref<16x128xbf16, #tpu.memory_space<vmem>>, %arg18: memref<32x128xbf16, #tpu.memory_space<vmem>>, %arg19: memref<1x128xf32, #tpu.memory_space<vmem>>, %arg20: memref<32x128xbf16, #tpu.memory_space<vmem>>, %arg21: memref<1x128xf32, #tpu.memory_space<vmem>>, %arg22: memref<128x16xbf16, #tpu.memory_space<vmem>>, %arg23: memref<1x8x128xf32, #tpu.memory_space<vmem>>, %arg24: memref<8x32xf32, #tpu.memory_space<vmem>>, %arg25: memref<8x32xf32, #tpu.memory_space<vmem>>, %arg26: memref<8x16xf32, #tpu.memory_space<vmem>>, %arg27: memref<8x8xf32, #tpu.memory_space<vmem>>) attributes {dimension_semantics = [#tpu.dimension_semantics<arbitrary>], iteration_bounds = array<i64: 5>, scalar_prefetch = 1 : i64, scratch_operands = 4 : i64, tpu.core_type = #tpu.core_type<tc>, window_params = [{transform_indices = @transform_0, window_bounds = array<i64: 1, 8, 16>}, {pipeline_mode = #tpu.pipeline_mode<synchronous>, transform_indices = @transform_1, window_bounds = array<i64: 8, 8, 32>}, {pipeline_mode = #tpu.pipeline_mode<synchronous>, transform_indices = @transform_2, window_bounds = array<i64: 8, 8, 32>}, {pipeline_mode = #tpu.pipeline_mode<synchronous>, transform_indices = @transform_3, window_bounds = array<i64: 8, 64>}, {pipeline_mode = #tpu.pipeline_mode<synchronous>, transform_indices = @transform_4, window_bounds = array<i64: 8, 64>}, {pipeline_mode = #tpu.pipeline_mode<synchronous>, transform_indices = @transform_5, window_bounds = array<i64: 64, 32>}, {pipeline_mode = #tpu.pipeline_mode<synchronous>, transform_indices = @transform_6, window_bounds = array<i64: 1, 32>}, {pipeline_mode = #tpu.pipeline_mode<synchronous>, transform_indices = @transform_7, window_bounds = array<i64: 64, 32>}, {pipeline_mode = #tpu.pipeline_mode<synchronous>, transform_indices = @transform_8, window_bounds = array<i64: 1, 32>}, {pipeline_mode = #tpu.pipeline_mode<synchronous>, transform_indices = @transform_9, window_bounds = array<i64: 1, 32>}, {pipeline_mode = #tpu.pipeline_mode<synchronous>, transform_indices = @transform_10, window_bounds = array<i64: 1, 32>}, {pipeline_mode = #tpu.pipeline_mode<synchronous>, transform_indices = @transform_11, window_bounds = array<i64: 1, 32>}, {pipeline_mode = #tpu.pipeline_mode<synchronous>, transform_indices = @transform_12, window_bounds = array<i64: 1, 1>}, {pipeline_mode = #tpu.pipeline_mode<synchronous>, transform_indices = @transform_13, window_bounds = array<i64: 32, 128>}, {pipeline_mode = #tpu.pipeline_mode<synchronous>, transform_indices = @transform_14, window_bounds = array<i64: 32, 128>}, {pipeline_mode = #tpu.pipeline_mode<synchronous>, transform_indices = @transform_15, window_bounds = array<i64: 16, 128>}, {pipeline_mode = #tpu.pipeline_mode<synchronous>, transform_indices = @transform_16, window_bounds = array<i64: 32, 128>}, {pipeline_mode = #tpu.pipeline_mode<synchronous>, transform_indices = @transform_17, window_bounds = array<i64: 1, 128>}, {pipeline_mode = #tpu.pipeline_mode<synchronous>, transform_indices = @transform_18, window_bounds = array<i64: 32, 128>}, {pipeline_mode = #tpu.pipeline_mode<synchronous>, transform_indices = @transform_19, window_bounds = array<i64: 1, 128>}, {pipeline_mode = #tpu.pipeline_mode<synchronous>, transform_indices = @transform_20, window_bounds = array<i64: 128, 16>}, {transform_indices = @transform_21, window_bounds = array<i64: 1, 8, 128>}]} {
    %c0_i32 = arith.constant 0 : i32
    %0 = arith.cmpi eq, %arg0, %c0_i32 : i32
    %1 = arith.extui %0 : i1 to i32
    %c0_i32_0 = arith.constant 0 : i32
    %2 = arith.cmpi ne, %1, %c0_i32_0 : i32
    scf.if %2 {
      %c0_66 = arith.constant 0 : index
      %c0_67 = arith.constant 0 : index
      %128 = vector.load %arg5[%c0_66, %c0_67] : memref<8x64xf32, #tpu.memory_space<vmem>>, vector<8x64xf32>
      %129 = arith.truncf %128 : vector<8x64xf32> to vector<8x64xbf16>
      %c0_68 = arith.constant 0 : index
      %c0_69 = arith.constant 0 : index
      %130 = vector.load %arg7[%c0_68, %c0_69] : memref<64x32xbf16, #tpu.memory_space<vmem>>, vector<64x32xbf16>
      %cst_70 = arith.constant dense<0.000000e+00> : vector<8x32xf32>
      %131 = tpu.matmul %129, %130, %cst_70 {dimension_numbers = #tpu.dot_dimension_numbers<[1], [0], [0], [1], [0, 0, 1, 1], [], []>} : vector<8x64xbf16>, vector<64x32xbf16>, vector<8x32xf32> -> vector<8x32xf32>
      %c0_71 = arith.constant 0 : index
      %c0_72 = arith.constant 0 : index
      %132 = vector.load %arg8[%c0_71, %c0_72] : memref<1x32xf32, #tpu.memory_space<vmem>>, vector<1x32xf32>
      %133 = vector.broadcast %132 : vector<1x32xf32> to vector<8x32xf32>
      %134 = arith.addf %131, %133 : vector<8x32xf32>
      %c0_73 = arith.constant 0 : index
      %c0_74 = arith.constant 0 : index
      %135 = vector.load %arg24[%c0_73, %c0_74] : memref<8x32xf32, #tpu.memory_space<vmem>>, vector<8x32xf32>
      tpu.vector_store %arg24[%c0_73, %c0_74], %134 {strides = array<i32>} : memref<8x32xf32, #tpu.memory_space<vmem>>, vector<8x32xf32>,
      %c0_75 = arith.constant 0 : index
      %c0_76 = arith.constant 0 : index
      %136 = vector.load %arg6[%c0_75, %c0_76] : memref<8x64xf32, #tpu.memory_space<vmem>>, vector<8x64xf32>
      %137 = arith.truncf %136 : vector<8x64xf32> to vector<8x64xbf16>
      %c0_77 = arith.constant 0 : index
      %c0_78 = arith.constant 0 : index
      %138 = vector.load %arg9[%c0_77, %c0_78] : memref<64x32xbf16, #tpu.memory_space<vmem>>, vector<64x32xbf16>
      %cst_79 = arith.constant dense<0.000000e+00> : vector<8x32xf32>
      %139 = tpu.matmul %137, %138, %cst_79 {dimension_numbers = #tpu.dot_dimension_numbers<[1], [0], [0], [1], [0, 0, 1, 1], [], []>} : vector<8x64xbf16>, vector<64x32xbf16>, vector<8x32xf32> -> vector<8x32xf32>
      %c0_80 = arith.constant 0 : index
      %c0_81 = arith.constant 0 : index
      %140 = vector.load %arg10[%c0_80, %c0_81] : memref<1x32xf32, #tpu.memory_space<vmem>>, vector<1x32xf32>
      %141 = vector.broadcast %140 : vector<1x32xf32> to vector<8x32xf32>
      %142 = arith.addf %139, %141 : vector<8x32xf32>
      %c0_82 = arith.constant 0 : index
      %c0_83 = arith.constant 0 : index
      %143 = vector.load %arg25[%c0_82, %c0_83] : memref<8x32xf32, #tpu.memory_space<vmem>>, vector<8x32xf32>
      tpu.vector_store %arg25[%c0_82, %c0_83], %142 {strides = array<i32>} : memref<8x32xf32, #tpu.memory_space<vmem>>, vector<8x32xf32>,
      %cst_84 = arith.constant 0.000000e+00 : f32
      %144 = vector.broadcast %cst_84 : f32 to vector<8x16xf32>
      %c0_85 = arith.constant 0 : index
      %c0_86 = arith.constant 0 : index
      %145 = vector.load %arg26[%c0_85, %c0_86] : memref<8x16xf32, #tpu.memory_space<vmem>>, vector<8x16xf32>
      tpu.vector_store %arg26[%c0_85, %c0_86], %144 {strides = array<i32>} : memref<8x16xf32, #tpu.memory_space<vmem>>, vector<8x16xf32>,
      %c0_87 = arith.constant 0 : index
      %c0_88 = arith.constant 0 : index
      %c0_89 = arith.constant 0 : index
      %146 = vector.load %arg3[%c0_87, %c0_88, %c0_89] : memref<8x8x32xf32, #tpu.memory_space<vmem>>, vector<8x8x32xf32>
      %c0_90 = arith.constant 0 : index
      %c0_91 = arith.constant 0 : index
      %147 = vector.load %arg12[%c0_90, %c0_91] : memref<1x32xf32, #tpu.memory_space<vmem>>, vector<1x32xf32>
      %148 = vector.shape_cast %147 : vector<1x32xf32> to vector<1x1x32xf32>
      %149 = vector.broadcast %148 : vector<1x1x32xf32> to vector<8x8x32xf32>
      %150 = arith.mulf %146, %149 : vector<8x8x32xf32>
      %cst_92 = arith.constant dense<0.000000e+00> : vector<8x8xf32>
      %151 = vector.multi_reduction <add>, %150, %cst_92 [2] : vector<8x8x32xf32> to vector<8x8xf32>
      %c0_93 = arith.constant 0 : index
      %c0_94 = arith.constant 0 : index
      %c0_95 = arith.constant 0 : index
      %152 = vector.load %arg4[%c0_93, %c0_94, %c0_95] : memref<8x8x32xf32, #tpu.memory_space<vmem>>, vector<8x8x32xf32>
      %c0_96 = arith.constant 0 : index
      %c0_97 = arith.constant 0 : index
      %153 = vector.load %arg13[%c0_96, %c0_97] : memref<1x32xf32, #tpu.memory_space<vmem>>, vector<1x32xf32>
      %154 = vector.shape_cast %153 : vector<1x32xf32> to vector<1x1x32xf32>
      %155 = vector.broadcast %154 : vector<1x1x32xf32> to vector<8x8x32xf32>
      %156 = arith.mulf %152, %155 : vector<8x8x32xf32>
      %cst_98 = arith.constant dense<0.000000e+00> : vector<8x8xf32>
      %157 = vector.multi_reduction <add>, %156, %cst_98 [2] : vector<8x8x32xf32> to vector<8x8xf32>
      %158 = arith.addf %151, %157 : vector<8x8xf32>
      %c0_99 = arith.constant 0 : index
      %c0_100 = arith.constant 0 : index
      %159 = vector.load %arg27[%c0_99, %c0_100] : memref<8x8xf32, #tpu.memory_space<vmem>>, vector<8x8xf32>
      tpu.vector_store %arg27[%c0_99, %c0_100], %158 {strides = array<i32>} : memref<8x8xf32, #tpu.memory_space<vmem>>, vector<8x8xf32>,
    } else {
    }
    %c0_i32_1 = arith.constant 0 : i32
    %3 = arith.cmpi eq, %arg0, %c0_i32_1 : i32
    %4 = arith.index_cast %arg0 : i32 to index
    %5 = memref.load %arg1[%4] : memref<6xi32, #tpu.memory_space<smem>>
    %c0_i32_2 = arith.constant 0 : i32
    %6 = arith.cmpi ne, %5, %c0_i32_2 : i32
    %7 = arith.ori %3, %6 : i1
    %8 = arith.extui %7 : i1 to i32
    %9 = arith.sitofp %8 : i32 to f32
    %c0 = arith.constant 0 : index
    %c0_3 = arith.constant 0 : index
    %c0_4 = arith.constant 0 : index
    %10 = vector.load %arg2[%c0, %c0_3, %c0_4] : memref<1x8x16xf32, #tpu.memory_space<vmem>>, vector<1x8x16xf32>
    %11 = vector.shape_cast %10 : vector<1x8x16xf32> to vector<8x16xf32>
    %12 = vector.broadcast %9 : f32 to vector<8x16xf32>
    %13 = arith.mulf %12, %11 : vector<8x16xf32>
    %cst = arith.constant 1.000000e+00 : f32
    %14 = arith.subf %cst, %9 : f32
    %c0_5 = arith.constant 0 : index
    %c0_6 = arith.constant 0 : index
    %15 = vector.load %arg26[%c0_5, %c0_6] : memref<8x16xf32, #tpu.memory_space<vmem>>, vector<8x16xf32>
    %16 = vector.broadcast %14 : f32 to vector<8x16xf32>
    %17 = arith.mulf %16, %15 : vector<8x16xf32>
    %18 = arith.addf %13, %17 : vector<8x16xf32>
    %c0_7 = arith.constant 0 : index
    %c0_8 = arith.constant 0 : index
    %19 = vector.load %arg24[%c0_7, %c0_8] : memref<8x32xf32, #tpu.memory_space<vmem>>, vector<8x32xf32>
    %c0_9 = arith.constant 0 : index
    %c0_10 = arith.constant 0 : index
    %20 = vector.load %arg11[%c0_9, %c0_10] : memref<1x32xf32, #tpu.memory_space<vmem>>, vector<1x32xf32>
    %21 = vector.broadcast %20 : vector<1x32xf32> to vector<8x32xf32>
    %22 = arith.mulf %19, %21 : vector<8x32xf32>
    %cst_11 = arith.constant dense<0.000000e+00> : vector<8xf32>
    %23 = vector.multi_reduction <add>, %22, %cst_11 [1] : vector<8x32xf32> to vector<8xf32>
    %c0_12 = arith.constant 0 : index
    %c0_13 = arith.constant 0 : index
    %24 = vector.load %arg27[%c0_12, %c0_13] : memref<8x8xf32, #tpu.memory_space<vmem>>, vector<8x8xf32>
    %25 = vector.shape_cast %23 : vector<8xf32> to vector<1x8xf32>
    %26 = vector.broadcast %25 : vector<1x8xf32> to vector<8x8xf32>
    %27 = arith.addf %24, %26 : vector<8x8xf32>
    %c0_14 = arith.constant 0 : index
    %c0_15 = arith.constant 0 : index
    %28 = vector.load %arg14[%c0_14, %c0_15] : memref<1x1xf32, #tpu.memory_space<vmem>>, vector<1x1xf32>
    %29 = vector.broadcast %28 : vector<1x1xf32> to vector<8x8xf32>
    %30 = arith.addf %27, %29 : vector<8x8xf32>
    %cst_16 = arith.constant 0.000000e+00 : f32
    %31 = vector.broadcast %cst_16 : f32 to vector<8x8xf32>
    %32 = arith.maximumf %30, %31 : vector<8x8xf32>
    %cst_17 = arith.constant dense<0xFF800000> : vector<8xf32>
    %33 = vector.multi_reduction <maximumf>, %32, %cst_17 [0] : vector<8x8xf32> to vector<8xf32>
    %34 = vector.shape_cast %33 : vector<8xf32> to vector<1x8xf32>
    %35 = vector.broadcast %34 : vector<1x8xf32> to vector<8x8xf32>
    %36 = arith.subf %32, %35 : vector<8x8xf32>
    %37 = math.exp %36 : vector<8x8xf32>
    %cst_18 = arith.constant dense<0.000000e+00> : vector<8xf32>
    %38 = vector.multi_reduction <add>, %37, %cst_18 [0] : vector<8x8xf32> to vector<8xf32>
    %39 = vector.shape_cast %38 : vector<8xf32> to vector<1x8xf32>
    %40 = vector.broadcast %39 : vector<1x8xf32> to vector<8x8xf32>
    %41 = arith.divf %37, %40 : vector<8x8xf32>
    %42 = vector.shape_cast %41 : vector<8x8xf32> to vector<8x8x1xf32>
    %c0_19 = arith.constant 0 : index
    %c0_20 = arith.constant 0 : index
    %c0_21 = arith.constant 0 : index
    %43 = vector.load %arg3[%c0_19, %c0_20, %c0_21] : memref<8x8x32xf32, #tpu.memory_space<vmem>>, vector<8x8x32xf32>
    %44 = vector.broadcast %42 : vector<8x8x1xf32> to vector<8x8x32xf32>
    %45 = arith.mulf %44, %43 : vector<8x8x32xf32>
    %cst_22 = arith.constant dense<0.000000e+00> : vector<8x32xf32>
    %46 = vector.multi_reduction <add>, %45, %cst_22 [0] : vector<8x8x32xf32> to vector<8x32xf32>
    %47 = vector.shape_cast %41 : vector<8x8xf32> to vector<8x8x1xf32>
    %c0_23 = arith.constant 0 : index
    %c0_24 = arith.constant 0 : index
    %c0_25 = arith.constant 0 : index
    %48 = vector.load %arg4[%c0_23, %c0_24, %c0_25] : memref<8x8x32xf32, #tpu.memory_space<vmem>>, vector<8x8x32xf32>
    %49 = vector.broadcast %47 : vector<8x8x1xf32> to vector<8x8x32xf32>
    %50 = arith.mulf %49, %48 : vector<8x8x32xf32>
    %cst_26 = arith.constant dense<0.000000e+00> : vector<8x32xf32>
    %51 = vector.multi_reduction <add>, %50, %cst_26 [0] : vector<8x8x32xf32> to vector<8x32xf32>
    %52 = arith.truncf %46 : vector<8x32xf32> to vector<8x32xbf16>
    %c0_27 = arith.constant 0 : index
    %c0_28 = arith.constant 0 : index
    %53 = vector.load %arg15[%c0_27, %c0_28] : memref<32x128xbf16, #tpu.memory_space<vmem>>, vector<32x128xbf16>
    %cst_29 = arith.constant dense<0.000000e+00> : vector<8x128xf32>
    %54 = tpu.matmul %52, %53, %cst_29 {dimension_numbers = #tpu.dot_dimension_numbers<[1], [0], [0], [1], [0, 0, 1, 1], [], []>} : vector<8x32xbf16>, vector<32x128xbf16>, vector<8x128xf32> -> vector<8x128xf32>
    %55 = arith.truncf %51 : vector<8x32xf32> to vector<8x32xbf16>
    %c0_30 = arith.constant 0 : index
    %c0_31 = arith.constant 0 : index
    %56 = vector.load %arg16[%c0_30, %c0_31] : memref<32x128xbf16, #tpu.memory_space<vmem>>, vector<32x128xbf16>
    %cst_32 = arith.constant dense<0.000000e+00> : vector<8x128xf32>
    %57 = tpu.matmul %55, %56, %cst_32 {dimension_numbers = #tpu.dot_dimension_numbers<[1], [0], [0], [1], [0, 0, 1, 1], [], []>} : vector<8x32xbf16>, vector<32x128xbf16>, vector<8x128xf32> -> vector<8x128xf32>
    %58 = arith.addf %54, %57 : vector<8x128xf32>
    %59 = arith.truncf %18 : vector<8x16xf32> to vector<8x16xbf16>
    %c0_33 = arith.constant 0 : index
    %c0_34 = arith.constant 0 : index
    %60 = vector.load %arg17[%c0_33, %c0_34] : memref<16x128xbf16, #tpu.memory_space<vmem>>, vector<16x128xbf16>
    %cst_35 = arith.constant dense<0.000000e+00> : vector<8x128xf32>
    %61 = tpu.matmul %59, %60, %cst_35 {dimension_numbers = #tpu.dot_dimension_numbers<[1], [0], [0], [1], [0, 0, 1, 1], [], []>} : vector<8x16xbf16>, vector<16x128xbf16>, vector<8x128xf32> -> vector<8x128xf32>
    %62 = arith.addf %58, %61 : vector<8x128xf32>
    %63 = arith.truncf %19 : vector<8x32xf32> to vector<8x32xbf16>
    %c0_36 = arith.constant 0 : index
    %c0_37 = arith.constant 0 : index
    %64 = vector.load %arg18[%c0_36, %c0_37] : memref<32x128xbf16, #tpu.memory_space<vmem>>, vector<32x128xbf16>
    %cst_38 = arith.constant dense<0.000000e+00> : vector<8x128xf32>
    %65 = tpu.matmul %63, %64, %cst_38 {dimension_numbers = #tpu.dot_dimension_numbers<[1], [0], [0], [1], [0, 0, 1, 1], [], []>} : vector<8x32xbf16>, vector<32x128xbf16>, vector<8x128xf32> -> vector<8x128xf32>
    %66 = arith.addf %62, %65 : vector<8x128xf32>
    %c0_39 = arith.constant 0 : index
    %c0_40 = arith.constant 0 : index
    %67 = vector.load %arg19[%c0_39, %c0_40] : memref<1x128xf32, #tpu.memory_space<vmem>>, vector<1x128xf32>
    %68 = vector.broadcast %67 : vector<1x128xf32> to vector<8x128xf32>
    %69 = arith.addf %66, %68 : vector<8x128xf32>
    %70 = vector.extract_strided_slice %69 {offsets = [0, 0], sizes = [8, 32], strides = [1, 1]} : vector<8x128xf32> to vector<8x32xf32>
    %71 = arith.negf %70 : vector<8x32xf32>
    %72 = math.exp %71 : vector<8x32xf32>
    %cst_41 = arith.constant 1.000000e+00 : f32
    %73 = vector.broadcast %cst_41 : f32 to vector<8x32xf32>
    %74 = arith.addf %73, %72 : vector<8x32xf32>
    %75 = arith.divf %73, %74 : vector<8x32xf32>
    %76 = vector.extract_strided_slice %69 {offsets = [0, 32], sizes = [8, 32], strides = [1, 1]} : vector<8x128xf32> to vector<8x32xf32>
    %77 = arith.negf %76 : vector<8x32xf32>
    %78 = math.exp %77 : vector<8x32xf32>
    %cst_42 = arith.constant 1.000000e+00 : f32
    %79 = vector.broadcast %cst_42 : f32 to vector<8x32xf32>
    %80 = arith.addf %79, %78 : vector<8x32xf32>
    %81 = arith.divf %79, %80 : vector<8x32xf32>
    %82 = vector.extract_strided_slice %69 {offsets = [0, 64], sizes = [8, 32], strides = [1, 1]} : vector<8x128xf32> to vector<8x32xf32>
    %83 = math.tanh %82 : vector<8x32xf32>
    %84 = vector.extract_strided_slice %69 {offsets = [0, 96], sizes = [8, 32], strides = [1, 1]} : vector<8x128xf32> to vector<8x32xf32>
    %85 = arith.negf %84 : vector<8x32xf32>
    %86 = math.exp %85 : vector<8x32xf32>
    %cst_43 = arith.constant 1.000000e+00 : f32
    %87 = vector.broadcast %cst_43 : f32 to vector<8x32xf32>
    %88 = arith.addf %87, %86 : vector<8x32xf32>
    %89 = arith.divf %87, %88 : vector<8x32xf32>
    %c0_44 = arith.constant 0 : index
    %c0_45 = arith.constant 0 : index
    %90 = vector.load %arg25[%c0_44, %c0_45] : memref<8x32xf32, #tpu.memory_space<vmem>>, vector<8x32xf32>
    %91 = arith.mulf %81, %90 : vector<8x32xf32>
    %92 = arith.mulf %75, %83 : vector<8x32xf32>
    %93 = arith.addf %91, %92 : vector<8x32xf32>
    %94 = math.tanh %93 : vector<8x32xf32>
    %95 = arith.mulf %89, %94 : vector<8x32xf32>
    %c0_46 = arith.constant 0 : index
    %c0_47 = arith.constant 0 : index
    %96 = vector.load %arg24[%c0_46, %c0_47] : memref<8x32xf32, #tpu.memory_space<vmem>>, vector<8x32xf32>
    tpu.vector_store %arg24[%c0_46, %c0_47], %95 {strides = array<i32>} : memref<8x32xf32, #tpu.memory_space<vmem>>, vector<8x32xf32>,
    %c0_48 = arith.constant 0 : index
    %c0_49 = arith.constant 0 : index
    %97 = vector.load %arg25[%c0_48, %c0_49] : memref<8x32xf32, #tpu.memory_space<vmem>>, vector<8x32xf32>
    tpu.vector_store %arg25[%c0_48, %c0_49], %93 {strides = array<i32>} : memref<8x32xf32, #tpu.memory_space<vmem>>, vector<8x32xf32>,
    %98 = arith.truncf %95 : vector<8x32xf32> to vector<8x32xbf16>
    %c0_50 = arith.constant 0 : index
    %c0_51 = arith.constant 0 : index
    %99 = vector.load %arg20[%c0_50, %c0_51] : memref<32x128xbf16, #tpu.memory_space<vmem>>, vector<32x128xbf16>
    %cst_52 = arith.constant dense<0.000000e+00> : vector<8x128xf32>
    %100 = tpu.matmul %98, %99, %cst_52 {dimension_numbers = #tpu.dot_dimension_numbers<[1], [0], [0], [1], [0, 0, 1, 1], [], []>} : vector<8x32xbf16>, vector<32x128xbf16>, vector<8x128xf32> -> vector<8x128xf32>
    %c0_53 = arith.constant 0 : index
    %c0_54 = arith.constant 0 : index
    %101 = vector.load %arg21[%c0_53, %c0_54] : memref<1x128xf32, #tpu.memory_space<vmem>>, vector<1x128xf32>
    %102 = vector.broadcast %101 : vector<1x128xf32> to vector<8x128xf32>
    %103 = arith.addf %100, %102 : vector<8x128xf32>
    %c0_55 = arith.constant 0 : index
    %c0_56 = arith.constant 0 : index
    %c0_57 = arith.constant 0 : index
    %104 = vector.load %arg23[%c0_55, %c0_56, %c0_57] : memref<1x8x128xf32, #tpu.memory_space<vmem>>, vector<1x8x128xf32>
    %105 = vector.shape_cast %104 : vector<1x8x128xf32> to vector<8x128xf32>
    %106 = vector.shape_cast %103 : vector<8x128xf32> to vector<1x8x128xf32>
    tpu.vector_store %arg23[%c0_55, %c0_56, %c0_57], %106 {strides = array<i32>} : memref<1x8x128xf32, #tpu.memory_space<vmem>>, vector<1x8x128xf32>,
    %107 = tpu.iota {dimensions = array<i32: 1>} : vector<8x128xi32>
    %c12_i32 = arith.constant 12 : i32
    %108 = vector.broadcast %c12_i32 : i32 to vector<8x128xi32>
    %109 = arith.cmpi slt, %107, %108 : vector<8x128xi32>
    %cst_58 = arith.constant 0xFF800000 : f32
    %110 = vector.broadcast %cst_58 : f32 to vector<8x128xf32>
    %111 = arith.select %109, %103, %110 : vector<8x128xi1>, vector<8x128xf32>
    %cst_59 = arith.constant dense<0xFF800000> : vector<8xf32>
    %112 = vector.multi_reduction <maximumf>, %111, %cst_59 [1] : vector<8x128xf32> to vector<8xf32>
    %113 = vector.shape_cast %112 : vector<8xf32> to vector<8x1xf32>
    %114 = vector.broadcast %113 : vector<8x1xf32> to vector<8x128xf32>
    %115 = arith.cmpf oeq, %111, %114 : vector<8x128xf32>
    %c128_i32 = arith.constant 128 : i32
    %116 = vector.broadcast %c128_i32 : i32 to vector<8x128xi32>
    %117 = arith.select %115, %107, %116 : vector<8x128xi1>, vector<8x128xi32>
    %cst_60 = arith.constant dense<2147483647> : vector<8xi32>
    %118 = vector.multi_reduction <minsi>, %117, %cst_60 [1] : vector<8x128xi32> to vector<8xi32>
    %119 = vector.shape_cast %118 : vector<8xi32> to vector<8x1xi32>
    %120 = vector.broadcast %119 : vector<8x1xi32> to vector<8x128xi32>
    %121 = arith.cmpi eq, %107, %120 : vector<8x128xi32>
    %122 = arith.extui %121 : vector<8x128xi1> to vector<8x128xi32>
    %123 = arith.sitofp %122 : vector<8x128xi32> to vector<8x128xf32>
    %124 = arith.truncf %123 : vector<8x128xf32> to vector<8x128xbf16>
    %c0_61 = arith.constant 0 : index
    %c0_62 = arith.constant 0 : index
    %125 = vector.load %arg22[%c0_61, %c0_62] : memref<128x16xbf16, #tpu.memory_space<vmem>>, vector<128x16xbf16>
    %cst_63 = arith.constant dense<0.000000e+00> : vector<8x16xf32>
    %126 = tpu.matmul %124, %125, %cst_63 {dimension_numbers = #tpu.dot_dimension_numbers<[1], [0], [0], [1], [0, 0, 1, 1], [], []>} : vector<8x128xbf16>, vector<128x16xbf16>, vector<8x16xf32> -> vector<8x16xf32>
    %c0_64 = arith.constant 0 : index
    %c0_65 = arith.constant 0 : index
    %127 = vector.load %arg26[%c0_64, %c0_65] : memref<8x16xf32, #tpu.memory_space<vmem>>, vector<8x16xf32>
    tpu.vector_store %arg26[%c0_64, %c0_65], %126 {strides = array<i32>} : memref<8x16xf32, #tpu.memory_space<vmem>>, vector<8x16xf32>,
    return
  }
  func.func @transform_0(%arg0: i32, %arg1: memref<6xi32, #tpu.memory_space<smem>>) -> (i32, i32, i32) {
    %c0_i32 = arith.constant 0 : i32
    %c0_i32_0 = arith.constant 0 : i32
    %c0_i32_1 = arith.constant 0 : i32
    return %arg0, %c0_i32, %c0_i32_0 : i32, i32, i32
  }
  func.func @transform_1(%arg0: i32, %arg1: memref<6xi32, #tpu.memory_space<smem>>) -> (i32, i32, i32) {
    %c0_i32 = arith.constant 0 : i32
    %c0_i32_0 = arith.constant 0 : i32
    %c0_i32_1 = arith.constant 0 : i32
    %c0_i32_2 = arith.constant 0 : i32
    return %c0_i32, %c0_i32_0, %c0_i32_1 : i32, i32, i32
  }
  func.func @transform_2(%arg0: i32, %arg1: memref<6xi32, #tpu.memory_space<smem>>) -> (i32, i32, i32) {
    %c0_i32 = arith.constant 0 : i32
    %c0_i32_0 = arith.constant 0 : i32
    %c0_i32_1 = arith.constant 0 : i32
    %c0_i32_2 = arith.constant 0 : i32
    return %c0_i32, %c0_i32_0, %c0_i32_1 : i32, i32, i32
  }
  func.func @transform_3(%arg0: i32, %arg1: memref<6xi32, #tpu.memory_space<smem>>) -> (i32, i32) {
    %c0_i32 = arith.constant 0 : i32
    %c0_i32_0 = arith.constant 0 : i32
    %c0_i32_1 = arith.constant 0 : i32
    return %c0_i32, %c0_i32_0 : i32, i32
  }
  func.func @transform_4(%arg0: i32, %arg1: memref<6xi32, #tpu.memory_space<smem>>) -> (i32, i32) {
    %c0_i32 = arith.constant 0 : i32
    %c0_i32_0 = arith.constant 0 : i32
    %c0_i32_1 = arith.constant 0 : i32
    return %c0_i32, %c0_i32_0 : i32, i32
  }
  func.func @transform_5(%arg0: i32, %arg1: memref<6xi32, #tpu.memory_space<smem>>) -> (i32, i32) {
    %c0_i32 = arith.constant 0 : i32
    %c0_i32_0 = arith.constant 0 : i32
    %c0_i32_1 = arith.constant 0 : i32
    return %c0_i32, %c0_i32_0 : i32, i32
  }
  func.func @transform_6(%arg0: i32, %arg1: memref<6xi32, #tpu.memory_space<smem>>) -> (i32, i32) {
    %c0_i32 = arith.constant 0 : i32
    %c0_i32_0 = arith.constant 0 : i32
    %c0_i32_1 = arith.constant 0 : i32
    return %c0_i32, %c0_i32_0 : i32, i32
  }
  func.func @transform_7(%arg0: i32, %arg1: memref<6xi32, #tpu.memory_space<smem>>) -> (i32, i32) {
    %c0_i32 = arith.constant 0 : i32
    %c0_i32_0 = arith.constant 0 : i32
    %c0_i32_1 = arith.constant 0 : i32
    return %c0_i32, %c0_i32_0 : i32, i32
  }
  func.func @transform_8(%arg0: i32, %arg1: memref<6xi32, #tpu.memory_space<smem>>) -> (i32, i32) {
    %c0_i32 = arith.constant 0 : i32
    %c0_i32_0 = arith.constant 0 : i32
    %c0_i32_1 = arith.constant 0 : i32
    return %c0_i32, %c0_i32_0 : i32, i32
  }
  func.func @transform_9(%arg0: i32, %arg1: memref<6xi32, #tpu.memory_space<smem>>) -> (i32, i32) {
    %c0_i32 = arith.constant 0 : i32
    %c0_i32_0 = arith.constant 0 : i32
    %c0_i32_1 = arith.constant 0 : i32
    return %c0_i32, %c0_i32_0 : i32, i32
  }
  func.func @transform_10(%arg0: i32, %arg1: memref<6xi32, #tpu.memory_space<smem>>) -> (i32, i32) {
    %c0_i32 = arith.constant 0 : i32
    %c0_i32_0 = arith.constant 0 : i32
    %c0_i32_1 = arith.constant 0 : i32
    return %c0_i32, %c0_i32_0 : i32, i32
  }
  func.func @transform_11(%arg0: i32, %arg1: memref<6xi32, #tpu.memory_space<smem>>) -> (i32, i32) {
    %c0_i32 = arith.constant 0 : i32
    %c0_i32_0 = arith.constant 0 : i32
    %c0_i32_1 = arith.constant 0 : i32
    return %c0_i32, %c0_i32_0 : i32, i32
  }
  func.func @transform_12(%arg0: i32, %arg1: memref<6xi32, #tpu.memory_space<smem>>) -> (i32, i32) {
    %c0_i32 = arith.constant 0 : i32
    %c0_i32_0 = arith.constant 0 : i32
    %c0_i32_1 = arith.constant 0 : i32
    return %c0_i32, %c0_i32_0 : i32, i32
  }
  func.func @transform_13(%arg0: i32, %arg1: memref<6xi32, #tpu.memory_space<smem>>) -> (i32, i32) {
    %c0_i32 = arith.constant 0 : i32
    %c0_i32_0 = arith.constant 0 : i32
    %c0_i32_1 = arith.constant 0 : i32
    return %c0_i32, %c0_i32_0 : i32, i32
  }
  func.func @transform_14(%arg0: i32, %arg1: memref<6xi32, #tpu.memory_space<smem>>) -> (i32, i32) {
    %c0_i32 = arith.constant 0 : i32
    %c0_i32_0 = arith.constant 0 : i32
    %c0_i32_1 = arith.constant 0 : i32
    return %c0_i32, %c0_i32_0 : i32, i32
  }
  func.func @transform_15(%arg0: i32, %arg1: memref<6xi32, #tpu.memory_space<smem>>) -> (i32, i32) {
    %c0_i32 = arith.constant 0 : i32
    %c0_i32_0 = arith.constant 0 : i32
    %c0_i32_1 = arith.constant 0 : i32
    return %c0_i32, %c0_i32_0 : i32, i32
  }
  func.func @transform_16(%arg0: i32, %arg1: memref<6xi32, #tpu.memory_space<smem>>) -> (i32, i32) {
    %c0_i32 = arith.constant 0 : i32
    %c0_i32_0 = arith.constant 0 : i32
    %c0_i32_1 = arith.constant 0 : i32
    return %c0_i32, %c0_i32_0 : i32, i32
  }
  func.func @transform_17(%arg0: i32, %arg1: memref<6xi32, #tpu.memory_space<smem>>) -> (i32, i32) {
    %c0_i32 = arith.constant 0 : i32
    %c0_i32_0 = arith.constant 0 : i32
    %c0_i32_1 = arith.constant 0 : i32
    return %c0_i32, %c0_i32_0 : i32, i32
  }
  func.func @transform_18(%arg0: i32, %arg1: memref<6xi32, #tpu.memory_space<smem>>) -> (i32, i32) {
    %c0_i32 = arith.constant 0 : i32
    %c0_i32_0 = arith.constant 0 : i32
    %c0_i32_1 = arith.constant 0 : i32
    return %c0_i32, %c0_i32_0 : i32, i32
  }
  func.func @transform_19(%arg0: i32, %arg1: memref<6xi32, #tpu.memory_space<smem>>) -> (i32, i32) {
    %c0_i32 = arith.constant 0 : i32
    %c0_i32_0 = arith.constant 0 : i32
    %c0_i32_1 = arith.constant 0 : i32
    return %c0_i32, %c0_i32_0 : i32, i32
  }
  func.func @transform_20(%arg0: i32, %arg1: memref<6xi32, #tpu.memory_space<smem>>) -> (i32, i32) {
    %c0_i32 = arith.constant 0 : i32
    %c0_i32_0 = arith.constant 0 : i32
    %c0_i32_1 = arith.constant 0 : i32
    return %c0_i32, %c0_i32_0 : i32, i32
  }
  func.func @transform_21(%arg0: i32, %arg1: memref<6xi32, #tpu.memory_space<smem>>) -> (i32, i32, i32) {
    %c0_i32 = arith.constant 0 : i32
    %c0_i32_0 = arith.constant 0 : i32
    %c0_i32_1 = arith.constant 0 : i32
    return %arg0, %c0_i32, %c0_i32_0 : i32, i32, i32
  }
}

</mosaic_0001>

<bundles_post_ra>
// kernel: seq2seq_forward.2
= control target key start
LH: loop header
LB: loop body
LE: loop exit
PB: predicated region body
PF: predicated region fallthrough
CT: control target
= control target key end

     0   :  { %s892_s30 = smov 0   ;;  %s987_s0 = inlined_call_operand.vmem [shape: f32[8,8,16], index: 0, kind: input, shape index: {}, may-alias: {0,1}]   ;;  %s988_s1 = inlined_call_operand.vmem [shape: f32[8,8,16], index: 1, kind: input, shape index: {}, may-alias: {0,1}]   ;;  %s989_s2 = inlined_call_operand.vmem [shape: bf16[16,256], index: 2, kind: input, shape index: {}]   ;;  %s990_s3 = inlined_call_operand.vmem [shape: bf16[16,256], index: 3, kind: input, shape index: {}]   ;;  %s991_s4 = inlined_call_operand.vmem [shape: bf16[64,256], index: 4, kind: input, shape index: {}]   ;;  %s992_s5 = inlined_call_operand.vmem [shape: f32[1,256], index: 5, kind: input, shape index: {}]   ;;  %s993_s6 = inlined_call_operand.vmem [shape: f32[8,8,32], index: 6, kind: output, shape index: {0}]   ;;  %s994_s7 = inlined_call_operand.vmem [shape: f32[8,8,32], index: 7, kind: output, shape index: {1}]   ;;  %s995_s8 = inlined_call_operand.vmem [shape: f32[8,64], index: 8, kind: output, shape index: {2}]   ;;  %s996_s9 = inlined_call_operand.vmem [shape: f32[8,64], index: 9, kind: output, shape index: {3}]  }
   0x1 LB: > { %s898_s10 = sadd.s32 4294967295, %s836_s30   ;;  %p762_p0 = scmp.ge.s32.totalorder %s836_s30, 1  ;;  %s836_s30 = sphi %s892_s30, %s20_s30  }
   0x2   : > { %p298_p1 = scmp.lt.s32.totalorder %s836_s30, 9 }
   0x4   : > { %p299_p2 = pnand %p762_p0, %p298_p1 }
   0x5   : > { %p342_p3 = scmp.lt.s32.totalorder (!%p299_p2), %s898_s10, 7  ;;  %s346_s11 = ssub.s32 (!%p299_p2), 7, %s898_s10 }
   0x6   : > { %302 = sbr.rel (%p299_p2) target bundleno = 533 (0x215), region = 44  ;;  %p347_p4 = scmp.lt.s32.totalorder (!%p299_p2), %s346_s11, 7 }
   0x7   : > { %p767_p5 = scmp.ne.s32.totalorder (!%p299_p2), %s898_s10, 0 }
   0xd   : > { %s343_s12 = scalar_select %p342_p3, %s898_s10, 7 }
   0xe   : > { %s998_s11 = smov (!%p347_p4, %s346_s11), 7  ;;  %366 = sbr.rel (%p767_p5) target bundleno = 21 (0x15), region = 48 }
   0xf   : > { %s763_s13 = sshll.u32 %s343_s12, 3  ;;  %s764_s17 = sshll.u32 %s998_s11, 3  ;;  %vm367_vm0 = vcmask (!%p767_p5), 523264   ;;  %v838_v0 = vmov (!%p767_p5), 0.0  }
  0x10   : > { %s908_s16 = scalar_lea.vmem %s987_s0, %s763_s13  ;;  %s350_s20 = scalar_lea.vmem %s988_s1, %s764_s17  ;;  %368 = vst.msk [vmem:[#allocation2] sm:$0xff] (!%p767_p5), %vm367_vm0, %v838_v0  ;;  %369 = vst.msk [vmem:[#allocation3] sm:$0xff] (!%p767_p5), %vm367_vm0, %v838_v0 }
  0x11   : > { %s916_s23 = scalar_lea.vmem %s993_s6, %s763_s13  ;;  %s921_s26 = scalar_lea.vmem %s994_s7, %s764_s17 }
  0x15 PF: > { %v800_v1 = vld [vmem:[%s990_s3 + $0x4] ss:$8 sps:$4 sm:$0xff]   ;;  %v839_v3 = vmov 0   ;;  %v804_v4 = vld [vmem:[%s990_s3] ss:$8 sps:$4 sm:$0xff]   ;;  %vm388_vm1 = vcmask 130048   ;;  %v586_v21 = vlaneseq }
  0x16   : > { %v802_v2 = vld [vmem:[%s991_s4 + $0x4] ss:$8 sps:$4 sm:$0xff]   ;;  %424 = vmatprep.mubr.bf16.mxu1 %v839_v3  ;;  %573 = vmatprep.mubr.bf16.mxu0 %v839_v3  ;;  %v805_v5 = vld [vmem:[%s991_s4] ss:$8 sps:$4 sm:$0xff]   ;;  %v806_v8 = vld [vmem:[%s991_s4 + $0x14] ss:$8 sps:$4 sm:$0xff]  }
  0x17   : > { %392 = vmatprep.subr.bf16.mxu1 %v800_v1  ;;  %v374_v6 = vld [vmem:[%s350_s20] sm:$0xff]  ;;  %541 = vmatprep.subr.bf16.mxu0 %v802_v2  ;;  %v811_v11 = vld [vmem:[%s991_s4 + $0x10] ss:$8 sps:$4 sm:$0xff]   ;;  %v815_v15 = vld [vmem:[%s991_s4 + $0x34] ss:$8 sps:$4 sm:$0xff]   ;;  %s840_s14 = smov 64  }
  0x18   : > { %v375_v7 = vpack.c.bf16 %v374_v6, %v374_v6  ;;  %393 = vmatpush1.bf16.msra.mxu1 %v804_v4  ;;  %542 = vmatpush1.bf16.msra.mxu0 %v805_v5  ;;  %v808_v9 = vld [vmem:[%s989_s2] ss:$8 sps:$4 sm:$0xff]   ;;  %v810_v10 = vld [vmem:[%s989_s2 + $0x4] ss:$8 sps:$4 sm:$0xff]   ;;  %v817_v18 = vld [vmem:[%s991_s4 + $0x30] ss:$8 sps:$4 sm:$0xff]  }
  0x19   : > { %543 = vmatprep.subr.bf16.mxu0 %v806_v8  ;;  %v812_v12 = vld [vmem:[%s991_s4 + $0x24] ss:$8 sps:$4 sm:$0xff]   ;;  %446 = vmatprep.subr.bf16.mxu1 %v810_v10  ;;  %v814_v13 = vld [vmem:[%s991_s4 + $0x20] ss:$8 sps:$4 sm:$0xff]   ;;  %vm537_vm2 = vcmask 523264   ;;  %v587_v26 = vshrl.u32 %v586_v21, 7 }
  0x1a   : > { %v370_v14 = vld [vmem:[%s908_s16] sm:$0xff]  ;;  %v611_v16 = vld [vmem:[#allocation3] sm:$0xff]  ;;  %s841_s19 = smov 32   ;;  %vm635_vm3 = vcmask 261120   ;;  %p785_p6 = scmp.ne.s32.totalorder %s898_s10, 7 }
  0x1b   : > { %770 = vmatmul.mubr.msk.bf16.vlgmr.msra.gmra.mrb[0].mxu1 %vm388_vm1, %v375_v7  ;;  %613 = vrot.lane.b32.xlu0 %v611_v16, %s840_s14  ;;  %v371_v17 = vpack.c.bf16 %v370_v14, %v370_v14  ;;  %v487_v19 = vld [vmem:[#allocation2] sm:$0xff]  ;;  %v588_v27 = vsub.s32 0, %v587_v26  ;;  %v592_v44 = vsub.s32 1, %v587_v26 }
  0x1c   : > { %544 = vmatpush1.bf16.msra.mxu0 %v811_v11  ;;  %447 = vmatpush1.bf16.msra.mxu1 %v808_v9  ;;  %v488_v20 = vpack.c.bf16 %v487_v19, %v487_v19  ;;  %v584_v29 = vld [vmem:[%s992_s5] sm:$0x3] }
  0x1d   : > { %545 = vmatprep.subr.bf16.mxu0 %v812_v12  ;;  %478 = vmatprep.mubr.bf16.mxu1 %v839_v3  ;;  %v589_v35 = vrot.slane %v584_v29, %v588_v27  ;;  %v593_v45 = vrot.slane %v584_v29, %v592_v44 }
  0x20   : > { %546 = vmatpush1.bf16.msra.mxu0 %v814_v13 }
  0x21   : > { %547 = vmatprep.subr.bf16.mxu0 %v815_v15 }
  0x23   : > { %773 = vmatmul.mubr.msk.bf16.vlgmr.msra.gmra.mrb[4].mxu1 %vm388_vm1, %v371_v17 }
  0x24   : > { %548 = vmatpush1.bf16.msra.mxu0 %v817_v18 }
  0x27   : > { %782 = vmatmul.mubr.msk.bf16.vlgmr.msra.gmra.mrb[0].mxu0 %vm537_vm2, %v488_v20 }
  0x8d   : > { %v614_v54 = vpop.permute.xlu0 %613 }
  0xee   : > { %v426_v22 = vpop.f32.mrb[0].mxu1 }
  0xef   : > { %v428_v23 = vpop.f32.mrb[1].mxu1 }
  0xf0   : > { %v430_v24 = vpop.f32.mrb[2].mxu1 }
  0xf1   : > { %v431_v25 = vpop.f32.mrb[3].mxu1 }
  0xf6   : > { %v480_v28 = vpop.f32.mrb[4].mxu1 }
  0xf7   : > { %v481_v30 = vadd.f32 %v480_v28, %v426_v22  ;;  %v482_v31 = vpop.f32.mrb[5].mxu1 }
  0xf8   : > { %v483_v32 = vadd.f32 %v482_v31, %v428_v23  ;;  %v484_v33 = vpop.f32.mrb[6].mxu1 }
  0xf9   : > { %v485_v34 = vpop.f32.mrb[7].mxu1 }
  0xfa   : > { %v575_v36 = vpop.f32.mrb[0].mxu0 }
  0xfb   : > { %v582_v37 = vadd.f32 %v575_v36, %v481_v30  ;;  %v577_v38 = vpop.f32.mrb[1].mxu0 }
  0xfc   : > { %v583_v39 = vadd.f32 %v577_v38, %v483_v32  ;;  %v579_v40 = vpop.f32.mrb[2].mxu0 }
  0xfd   : > { %v596_v41 = vadd.f32 %v589_v35, %v582_v37  ;;  %v580_v42 = vpop.f32.mrb[3].mxu0 }
  0xfe   : > { %v597_v46 = vadd.f32 %v593_v45, %v583_v39 }
  0xff   : > { %v783_v43 = vmul.f32 -1.442695, %v596_v41 }
 0x100   : > { %v784_v52 = vmul.f32 -1.442695, %v597_v46 }
 0x101   : > { %818 = vpow2.f32 %v783_v43 }
 0x102   : > { %820 = vtanh.f32 %v597_v46 }
 0x10b   : > { %v819_v47 = vpop.eup %818 }
 0x10c   : > { %v601_v48 = vadd.f32 1.0, %v819_v47  ;;  %v821_v49 = vpop.eup %820 }
 0x10e   : > { %822 = vrcp.f32 %v601_v48 }
 0x10f   : > { %824 = vpow2.f32 %v784_v52 }
 0x118   : > { %v823_v50 = vpop.eup %822 }
 0x119   : > { %v617_v51 = vmul.f32 %v823_v50, %v821_v49  ;;  %v825_v53 = vpop.eup %824  ;;  %v616_v56 = vmul.f32 %v823_v50, %v614_v54 }
 0x11a   : > { %v608_v55 = vadd.f32 1.0, %v825_v53 }
 0x11b   : > { %619 = vrot.lane.b32.xlu0 %v617_v51, %s840_s14 }
 0x11c   : > { %826 = vrcp.f32 %v608_v55 }
 0x126   : > { %v827_v59 = vpop.eup %826 }
 0x18d   : > { %v620_v57 = vpop.permute.xlu0 %619 }
 0x18e   : > { %v622_v58 = vadd.f32 %v620_v57, %v616_v56 }
 0x190   : > { %828 = vtanh.f32 %v622_v58 }
 0x19a   : > { %v829_v60 = vpop.eup %828 }
 0x19b   : > { %v624_v61 = vmul.f32 %v829_v60, %v827_v59 }
 0x19d   : > { %637 = vrot.lane.b32.xlu0 %v624_v61, %s841_s19  ;;  %626 = vrot.lane.b32.xlu1 %v624_v61, %s840_s14 }
 0x1a1   : > { %631 = vrot.lane.b32.xlu1 %v622_v58, %s840_s14 }
 0x20e   : > { %644 = sbr.rel (%p785_p6) target bundleno = 533 (0x215), region = 52 }
 0x20f   : > { %v638_v62 = vpop.permute.xlu0 %637  ;;  %v627_v63 = vpop.permute.xlu1 %626 }
 0x210   : > { %640 = vst.msk [vmem:[%s921_s26] sm:$0xff] %vm635_vm3, %v638_v62  ;;  %636 = vst.msk [vmem:[%s916_s23] sm:$0xff] %vm635_vm3, %v627_v63 }
 0x211   : > { %629 = vst.msk [vmem:[#allocation2] sm:$0xff] %vm537_vm2, %v627_v63  ;;  %645 = vst.msk [vmem:[%s995_s8] sm:$0xff] (!%p785_p6), %vm537_vm2, %v627_v63 }
 0x213   : > { %v632_v0 = vpop.permute.xlu1 %631 }
 0x214   : > { %634 = vst.msk [vmem:[#allocation3] sm:$0xff] %vm537_vm2, %v632_v0  ;;  %646 = vst.msk [vmem:[%s996_s9] sm:$0xff] (!%p785_p6), %vm537_vm2, %v632_v0 }
 0x215 PF: > { %s20_s30 = sadd.s32 1, %s836_s30  }
 0x216   : > { %p17_p7 = scmp.ge.s32.totalorder %s20_s30, 10  }
 0x218   :  { %19 = sbr.rel (!%p17_p7) target bundleno = 1 (0x1), region = 113 }

// kernel: seq2seq_forward.3
= control target key start
LH: loop header
LB: loop body
LE: loop exit
PB: predicated region body
PF: predicated region fallthrough
CT: control target
= control target key end

     0   :  { %s2473_s0 = inlined_call_operand.vmem [shape: s32[6], index: 0, kind: input, shape index: {}]   ;;  %s2474_s1 = inlined_call_operand.vmem [shape: f32[6,8,16], index: 1, kind: input, shape index: {}]   ;;  %s2475_s2 = inlined_call_operand.vmem [shape: f32[8,8,32], index: 2, kind: input, shape index: {}]   ;;  %s2476_s3 = inlined_call_operand.vmem [shape: f32[8,8,32], index: 3, kind: input, shape index: {}]   ;;  %s2477_s4 = inlined_call_operand.vmem [shape: f32[8,64], index: 4, kind: input, shape index: {}]   ;;  %s2478_s5 = inlined_call_operand.vmem [shape: f32[8,64], index: 5, kind: input, shape index: {}]   ;;  %s2479_s6 = inlined_call_operand.vmem [shape: bf16[64,32], index: 6, kind: input, shape index: {}]   ;;  %s2480_s7 = inlined_call_operand.vmem [shape: f32[1,32], index: 7, kind: input, shape index: {}]   ;;  %s2481_s8 = inlined_call_operand.vmem [shape: bf16[64,32], index: 8, kind: input, shape index: {}]   ;;  %s2482_s9 = inlined_call_operand.vmem [shape: f32[1,32], index: 9, kind: input, shape index: {}]   ;;  %s2483_s10 = inlined_call_operand.vmem [shape: f32[1,32], index: 10, kind: input, shape index: {}]   ;;  %s2484_s11 = inlined_call_operand.vmem [shape: f32[1,32], index: 11, kind: input, shape index: {}]   ;;  %s2485_s12 = inlined_call_operand.vmem [shape: f32[1,32], index: 12, kind: input, shape index: {}]   ;;  %s2486_s14 = inlined_call_operand.vmem [shape: bf16[32,128], index: 14, kind: input, shape index: {}]   ;;  %s2487_s15 = inlined_call_operand.vmem [shape: bf16[32,128], index: 15, kind: input, shape index: {}]   ;;  %s2488_s16 = inlined_call_operand.vmem [shape: bf16[16,128], index: 16, kind: input, shape index: {}]   ;;  %s2489_s17 = inlined_call_operand.vmem [shape: bf16[32,128], index: 17, kind: input, shape index: {}]   ;;  %s2490_s18 = inlined_call_operand.vmem [shape: f32[1,128], index: 18, kind: input, shape index: {}]   ;;  %s2491_s19 = inlined_call_operand.vmem [shape: bf16[32,128], index: 19, kind: input, shape index: {}]   ;;  %s2492_s20 = inlined_call_operand.vmem [shape: f32[1,128], index: 20, kind: input, shape index: {}]   ;;  %s2493_s21 = inlined_call_operand.vmem [shape: bf16[128,16], index: 21, kind: input, shape index: {}]   ;;  %s2494_s22 = inlined_call_operand.vmem [shape: f32[5,8,128], index: 22, kind: output, shape index: {}]   ;;  %s2495_s13 = inlined_call_operand.<no memory space> [shape: f32[1,1], index: 13, kind: input, shape index: {}]  }
   0x1   :  { %2501 = sst [smem:[#allocation10_spill]] %s2473_s0  ;;  %v31_v0 = vstv %s2495_s13 }
   0x2   :  { %2502 = sst [smem:[#allocation11_spill]] %s2474_s1  ;;  %s2510_s29 = sld [smem:[#allocation10_spill]]  ;;  %32 = vst [vmem:[#allocation8] sm:$0x1] %v31_v0 }
   0x3   :  { %2503 = sst [smem:[#allocation12_spill]] %s2475_s2 }
   0x4   :  { %2504 = sst [smem:[#allocation13_spill]] %s2476_s3 }
   0x5   :  { %2505 = sst [smem:[#allocation14_spill]] %s2477_s4 }
   0x6   :  { %2506 = sst [smem:[#allocation15_spill]] %s2478_s5 }
   0x7   :  { %2507 = sst [smem:[#allocation16_spill]] %s2479_s6 }
   0x8   :  { %2508 = sst [smem:[#allocation17_spill]] %s2485_s12 }
   0x9   :  { %2509 = sst [smem:[#allocation18_spill]] %s2488_s16  ;;  %s27_s16 = sshll.u32 %s2510_s29, 4  ;;  %s28_s16 = int_to_ptr.vmem [resolvable:$true] %s27_s16 }
   0xa   :  { %s1959_s0 = scalar_lea.vmem %s28_s16, 16  ;;  %p1964_p1 = scmp.lt.s32.totalorder %s28_s16, %s28_s16 }
   0xb   :  { %p1960_p0 = scmp.ne.s32.totalorder %s28_s16, %s1959_s0  ;;  %p1965_p2 = scmp.lt.s32.totalorder %s1959_s0, %s1959_s0 }
   0xd   :  { %p1966_p3 = por %p1965_p2, %p1964_p1 }
   0xf   :  { %p1967_p4 = pnand %p1966_p3, %p1960_p0 }
  0x11   :  { %1970 = shalt.err (!%p1967_p4)  }
  0x12   :  { %s1981_s23 = smov [#allocation7]  }
  0x13   :  { %30 = dma.vmem_to_smem %s28_s16, 16, %s1981_s23, [#allocation6] }
  0x14   :  { %1975 = dma.done.wait [#allocation6], 16 }
  0x15   :  { %1976 = vsyncadd [#allocation6], 4294967280 }
  0x16   :  { %34 = sfence }
  0x17   :  { %s2112_s1 = smov 0  }
  0x18 LB: > { %s2118_s13 = sadd.s32 4294967295, %s1979_s1   ;;  %p1738_p5 = scmp.ge.s32.totalorder %s1979_s1, 1  ;;  %s1979_s1 = sphi %s2112_s1, %s40_s1  }
  0x19   : > { %p595_p6 = scmp.lt.s32.totalorder %s1979_s1, 6 }
  0x1b   : > { %p596_p7 = pnand %p1738_p5, %p595_p6 }
  0x1c   : > { %p653_p8 = scmp.lt.s32.totalorder (!%p596_p7), %s2118_s13, 5  ;;  %p657_p9 = scmp.lt.s32.totalorder (!%p596_p7), %s2118_s13, 4 }
  0x1d   : > { %599 = sbr.rel (%p596_p7) target bundleno = 2241 (0x8c1), region = 104  ;;  %p662_p10 = scmp.eq.s32.totalorder (!%p596_p7), %s2118_s13, 0 }
  0x1e   : > { %s2511_s26 = sld [smem:[#allocation11_spill]] (!%p596_p7)  ;;  %p1741_p11 = scmp.ne.s32.totalorder (!%p596_p7), %s2118_s13, 0 }
  0x24   : > { %s654_s16 = scalar_select %p653_p8, %s2118_s13, 5 }
  0x25   : > { %s658_s5 = scalar_select %p657_p9, %s2118_s13, 4 }
  0x26   : > { %s1739_s24 = sshll.u32 %s654_s16, 3  ;;  %665 = sbr.rel (%p1741_p11) target bundleno = 277 (0x115), region = 108  ;;  %vm838_vm0 = vcmask (!%p1741_p11), 130048   ;;  %v1982_v1 = vmov (!%p1741_p11), 0.0   ;;  %v1922_v3 = vld [vmem:[%s2481_s8] sm:$0xff] (!%p1741_p11)   ;;  %vm1983_vm1 = vmmov (!%p1741_p11), 0  }
  0x27   : > { %s2130_s2 = scalar_lea.vmem %s2511_s26, %s1739_s24  ;;  %s1740_s27 = sshll.u32 %s658_s5, 3  ;;  %1821 = vmatprep.subr.bf16.mxu0 (!%p1741_p11), %v1982_v1  ;;  %839 = vst.msk [vmem:[#allocation4] sm:$0xff] (!%p1741_p11), %vm838_vm0, %v1982_v1  ;;  %1833 = vmatprep.subr.bf16.mxu1 (!%p1741_p11), %v1982_v1  ;;  %v1924_v5 = vld [vmem:[%s2481_s8 + $0x8] sm:$0xff] (!%p1741_p11)   ;;  %v1926_v7 = vld [vmem:[%s2481_s8 + $0x10] sm:$0xff] (!%p1741_p11)   ;;  %vm751_vm2 = vcmask (!%p1741_p11), 261120   ;;  %v1928_v21 = vld [vmem:[%s2481_s8 + $0x18] sm:$0xff] (!%p1741_p11)  }
  0x28   : > { %s2135_s29 = scalar_lea.vmem %s2494_s22, %s1740_s27  ;;  %s2512_s0 = sld [smem:[#allocation16_spill]] (!%p1741_p11)  ;;  %1829 = vmatprep.mubr.msk.bf16.mxu0 (!%p1741_p11), %vm1983_vm1, %v1982_v1  ;;  %1841 = vmatprep.mubr.msk.bf16.mxu1 (!%p1741_p11), %vm1983_vm1, %v1982_v1  ;;  %v2171_v12 = vld [vmem:[%s2484_s11] ss:$0 sm:$0xff] (!%p1741_p11)  ;;  %vm707_vm3 = vcmask (!%p1741_p11), 523264   ;;  %vm984_vm4 = vcmask (!%p1741_p11), 1041409   ;;  %vm986_vm5 = vcmask (!%p1741_p11), 1042434  }
  0x29   : > { %1834 = vmatpush3.bf16.msra.mxu1 (!%p1741_p11), %v1922_v3  ;;  %s2513_s23 = sld [smem:[#allocation13_spill]] (!%p1741_p11)  ;;  %s2514_s12 = sld [smem:[#allocation17_spill]] (!%p1741_p11)  ;;  %vm988_vm6 = vcmask (!%p1741_p11), 1043459   ;;  %vm990_vm7 = vcmask (!%p1741_p11), 1044484   ;;  %vm992_vm8 = vcmask (!%p1741_p11), 1045509   ;;  %vm994_vm9 = vcmask (!%p1741_p11), 1046534  }
  0x2a   : > { %1835 = vmatprep.subr.bf16.mxu1 (!%p1741_p11), %v1982_v1  ;;  %s2515_s25 = sld [smem:[#allocation12_spill]] (!%p1741_p11)  ;;  %s2517_s16 = sld [smem:[#allocation15_spill]] (!%p1741_p11)  ;;  %vm996_vm10 = vcmask (!%p1741_p11), 1047559   ;;  %vm999_vm11 = vcmask (!%p1741_p11), 64512  }
  0x2d   : > { %1836 = vmatpush3.bf16.msra.mxu1 %v1924_v5 }
  0x2e   : > { %v1921_v2 = vld [vmem:[%s2512_s0] sm:$0xff]   ;;  %v1923_v4 = vld [vmem:[%s2512_s0 + $0x8] sm:$0xff]   ;;  %v1925_v6 = vld [vmem:[%s2512_s0 + $0x10] sm:$0xff]   ;;  %1837 = vmatprep.subr.bf16.mxu1 %v1982_v1 }
  0x2f   : > { %1822 = vmatpush3.bf16.msra.mxu0 %v1921_v2  ;;  %v887_v8 = vld [vmem:[%s2513_s23] sm:$0xff]  ;;  %v888_v13 = vld [vmem:[%s2513_s23 + $0x8] sm:$0xff]  ;;  %v1927_v15 = vld [vmem:[%s2512_s0 + $0x18] sm:$0xff]  }
  0x30   : > { %1823 = vmatprep.subr.bf16.mxu0 %v1982_v1  ;;  %v2162_v9 = vld [vmem:[%s2514_s12] ss:$0 sm:$0xff]  ;;  %v841_v14 = vld [vmem:[%s2515_s25 + $0x8] sm:$0xff]  ;;  %s2516_s12 = sld [smem:[#allocation14_spill]]  ;;  %v889_v20 = vld [vmem:[%s2513_s23 + $0x10] sm:$0xff] }
  0x31   : > { %v840_v10 = vld [vmem:[%s2515_s25] sm:$0xff]  ;;  %v902_v11 = vmul.f32 %v2162_v9, %v887_v8  ;;  %v903_v18 = vmul.f32 %v2162_v9, %v888_v13  ;;  %v856_v19 = vmul.f32 %v2171_v12, %v841_v14  ;;  %1838 = vmatpush3.bf16.msra.mxu1 %v1926_v7  ;;  %v842_v24 = vld [vmem:[%s2515_s25 + $0x10] sm:$0xff]  ;;  %v904_v28 = vmul.f32 %v2162_v9, %v889_v20  ;;  %v890_v32 = vld [vmem:[%s2513_s23 + $0x18] sm:$0xff] }
  0x32   : > { %v855_v17 = vmul.f32 %v2171_v12, %v840_v10  ;;  %v753_v22 = vld [vmem:[%s2517_s16] sm:$0xff]  ;;  %1839 = vmatprep.subr.bf16.mxu1 %v1982_v1  ;;  %v857_v31 = vmul.f32 %v2171_v12, %v842_v24  ;;  %v843_v33 = vld [vmem:[%s2515_s25 + $0x18] sm:$0xff]  ;;  %v905_v35 = vmul.f32 %v2162_v9, %v890_v32  ;;  %v892_v44 = vld [vmem:[%s2513_s23 + $0x28] sm:$0xff] }
  0x33   : > { %1824 = vmatpush3.bf16.msra.mxu0 %v1923_v4  ;;  %v910_v23 = vsel %vm751_vm2, %v902_v11, 0.0  ;;  %v913_v27 = vsel %vm751_vm2, %v903_v18, 0.0  ;;  %v754_v29 = vpack.c.bf16 %v753_v22, %v753_v22  ;;  %v866_v30 = vsel %vm751_vm2, %v856_v19, 0.0  ;;  %v891_v38 = vld [vmem:[%s2513_s23 + $0x20] sm:$0xff]  ;;  %v845_v45 = vld [vmem:[%s2515_s25 + $0x28] sm:$0xff]  ;;  %v893_v50 = vld [vmem:[%s2513_s23 + $0x30] sm:$0xff] }
  0x34   : > { %1825 = vmatprep.subr.bf16.mxu0 %v1982_v1  ;;  %911 = vadd.xlane.f32.xlu1 %v910_v23  ;;  %v863_v25 = vsel %vm751_vm2, %v855_v17, 0.0  ;;  %v916_v34 = vsel %vm751_vm2, %v904_v28, 0.0  ;;  %v869_v36 = vsel %vm751_vm2, %v857_v31, 0.0  ;;  %v858_v37 = vmul.f32 %v2171_v12, %v843_v33  ;;  %v844_v39 = vld [vmem:[%s2515_s25 + $0x20] sm:$0xff]  ;;  %v846_v51 = vld [vmem:[%s2515_s25 + $0x30] sm:$0xff]  ;;  %v894_v56 = vld [vmem:[%s2513_s23 + $0x38] sm:$0xff] }
  0x35   : > { %864 = vadd.xlane.f32.xlu0 %v863_v25  ;;  %1840 = vmatpush3.bf16.msra.mxu1 %v1928_v21  ;;  %v919_v40 = vsel %vm751_vm2, %v905_v35, 0.0  ;;  %v906_v41 = vmul.f32 %v2162_v9, %v891_v38  ;;  %v859_v43 = vmul.f32 %v2171_v12, %v844_v39  ;;  %v907_v47 = vmul.f32 %v2162_v9, %v892_v44  ;;  %v847_v57 = vld [vmem:[%s2515_s25 + $0x38] sm:$0xff]  ;;  %v1748_v44 = vld [vmem:[%s2482_s9] ss:$0 sm:$0xff] }
  0x36   : > { %v666_v16 = vld [vmem:[%s2516_s12] sm:$0xff]  ;;  %v872_v42 = vsel %vm751_vm2, %v858_v37, 0.0  ;;  %v860_v49 = vmul.f32 %v2171_v12, %v845_v45  ;;  %v908_v53 = vmul.f32 %v2162_v9, %v893_v50  ;;  %v861_v55 = vmul.f32 %v2171_v12, %v846_v51 }
  0x37   : > { %1826 = vmatpush3.bf16.msra.mxu0 %v1925_v6  ;;  %v667_v26 = vpack.c.bf16 %v666_v16, %v666_v16  ;;  %v922_v46 = vsel %vm751_vm2, %v906_v41, 0.0  ;;  %v875_v48 = vsel %vm751_vm2, %v859_v43, 0.0  ;;  %v925_v52 = vsel %vm751_vm2, %v907_v47, 0.0  ;;  %v1742_v43 = vld [vmem:[%s2480_s7] ss:$0 sm:$0xff] }
  0x38   : > { %1827 = vmatprep.subr.bf16.mxu0 %v1982_v1  ;;  %914 = vadd.xlane.f32.xlu1 %v913_v27  ;;  %v878_v54 = vsel %vm751_vm2, %v860_v49, 0.0  ;;  %v928_v58 = vsel %vm751_vm2, %v908_v53, 0.0  ;;  %v909_v59 = vmul.f32 %v2162_v9, %v894_v56  ;;  %v881_v60 = vsel %vm751_vm2, %v861_v55, 0.0 }
  0x39   : > { %867 = vadd.xlane.f32.xlu0 %v866_v30  ;;  %1842 = vmatmul.mubr.msk.bf16.vlgmr.msra.gmra.mrb[0].mxu1 %vm707_vm3, %v754_v29  ;;  %v862_v61 = vmul.f32 %v2171_v12, %v847_v57  ;;  %v950_v1 = vlaneseq }
  0x3a   : > { %v931_v62 = vsel %vm751_vm2, %v909_v59, 0.0 }
  0x3b   : > { %1828 = vmatpush3.bf16.msra.mxu0 %v1927_v15  ;;  %v884_v63 = vsel %vm751_vm2, %v862_v61, 0.0  ;;  %v951_v3 = vand.u32 127, %v950_v1  ;;  %v953_v4 = vshrl.u32 %v950_v1, 7 }
  0x3c   : > { %917 = vadd.xlane.f32.xlu1 %v916_v34 }
  0x3d   : > { %870 = vadd.xlane.f32.xlu0 %v869_v36  ;;  %v954_v7 = vsub.s32 %v951_v3, %v953_v4 }
  0x3e   : > { %1830 = vmatmul.mubr.msk.bf16.vlgmr.msra.gmra.mrb[0].mxu0 %vm707_vm3, %v667_v26 }
  0x40   : > { %920 = vadd.xlane.f32.xlu1 %v919_v40 }
  0x41   : > { %873 = vadd.xlane.f32.xlu0 %v872_v42 }
  0x44   : > { %923 = vadd.xlane.f32.xlu1 %v922_v46 }
  0x45   : > { %876 = vadd.xlane.f32.xlu0 %v875_v48 }
  0x48   : > { %926 = vadd.xlane.f32.xlu1 %v925_v52 }
  0x49   : > { %879 = vadd.xlane.f32.xlu0 %v878_v54 }
  0x4c   : > { %929 = vadd.xlane.f32.xlu1 %v928_v58 }
  0x4d   : > { %882 = vadd.xlane.f32.xlu0 %v881_v60 }
  0x50   : > { %932 = vadd.xlane.f32.xlu1 %v931_v62 }
  0x51   : > { %885 = vadd.xlane.f32.xlu0 %v884_v63 }
  0xc1   : > { %v912_v0 = vpop.xlane.xlu1 %911 }
  0xc2   : > { %v865_v2 = vpop.xlane.xlu0 %864 }
  0xc3   : > { %v934_v8 = vadd.f32 %v912_v0, %v865_v2 }
  0xc5   : > { %v915_v5 = vpop.xlane.xlu1 %914  ;;  %v955_v13 = vrot.slane %v934_v8, %v954_v7 }
  0xc6   : > { %v868_v6 = vpop.xlane.xlu0 %867 }
  0xc7   : > { %v935_v9 = vadd.f32 %v915_v5, %v868_v6 }
  0xc9   : > { %v918_v10 = vpop.xlane.xlu1 %917  ;;  %v959_v14 = vrot.slane %v935_v9, %v954_v7 }
  0xca   : > { %v871_v11 = vpop.xlane.xlu0 %870 }
  0xcb   : > { %v936_v12 = vadd.f32 %v918_v10, %v871_v11  ;;  %v985_v19 = vsel %vm984_vm4, %v959_v14, %v955_v13 }
  0xcd   : > { %v921_v15 = vpop.xlane.xlu1 %920  ;;  %v963_v18 = vrot.slane %v936_v12, %v954_v7 }
  0xce   : > { %v874_v16 = vpop.xlane.xlu0 %873 }
  0xcf   : > { %v937_v17 = vadd.f32 %v921_v15, %v874_v16  ;;  %v987_v24 = vsel %vm986_vm5, %v963_v18, %v985_v19 }
  0xd1   : > { %v924_v20 = vpop.xlane.xlu1 %923  ;;  %v967_v22 = vrot.slane %v937_v17, %v954_v7 }
  0xd2   : > { %v877_v21 = vpop.xlane.xlu0 %876 }
  0xd3   : > { %v938_v23 = vadd.f32 %v924_v20, %v877_v21  ;;  %v989_v28 = vsel %vm988_vm6, %v967_v22, %v987_v24 }
  0xd5   : > { %v927_v25 = vpop.xlane.xlu1 %926  ;;  %v971_v26 = vrot.slane %v938_v23, %v954_v7 }
  0xd6   : > { %v880_v27 = vpop.xlane.xlu0 %879 }
  0xd7   : > { %v939_v29 = vadd.f32 %v927_v25, %v880_v27  ;;  %v991_v32 = vsel %vm990_vm7, %v971_v26, %v989_v28 }
  0xd9   : > { %v975_v30 = vrot.slane %v939_v29, %v954_v7  ;;  %v930_v31 = vpop.xlane.xlu1 %929 }
  0xda   : > { %v883_v33 = vpop.xlane.xlu0 %882 }
  0xdb   : > { %v940_v34 = vadd.f32 %v930_v31, %v883_v33  ;;  %v993_v35 = vsel %vm992_vm8, %v975_v30, %v991_v32 }
  0xdd   : > { %v979_v36 = vrot.slane %v940_v34, %v954_v7  ;;  %v933_v37 = vpop.xlane.xlu1 %932 }
  0xde   : > { %v886_v38 = vpop.xlane.xlu0 %885 }
  0xdf   : > { %v941_v39 = vadd.f32 %v933_v37, %v886_v38  ;;  %v995_v40 = vsel %vm994_vm9, %v979_v36, %v993_v35 }
  0xe1   : > { %v983_v41 = vrot.slane %v941_v39, %v954_v7 }
  0xe3   : > { %v997_v42 = vsel %vm996_vm10, %v983_v41, %v995_v40 }
  0xe4   : > { %1000 = vst.msk [vmem:[#allocation5] sm:$0xff] %vm999_vm11, %v997_v42 }
 0x10c   : > { %v831_v47 = vpop.f32.mrb[0].mxu1 }
 0x10d   : > { %v832_v49 = vadd.f32 %v1748_v44, %v831_v47  ;;  %v1843_v50 = vpop.f32.mrb[1].mxu1 }
 0x10e   : > { %v834_v52 = vpop.f32.mrb[2].mxu1 }
 0x10f   : > { %837 = vst.msk [vmem:[#allocation3] sm:$0xff] %vm751_vm2, %v832_v49  ;;  %v1844_v54 = vpop.f32.mrb[3].mxu1 }
 0x111   : > { %v745_v45 = vpop.f32.mrb[0].mxu0 }
 0x112   : > { %v746_v46 = vadd.f32 %v1742_v43, %v745_v45  ;;  %v1831_v48 = vpop.f32.mrb[1].mxu0 }
 0x113   : > { %v748_v51 = vpop.f32.mrb[2].mxu0 }
 0x114   : > { %752 = vst.msk [vmem:[#allocation2] sm:$0xff] %vm751_vm2, %v746_v46  ;;  %v1832_v53 = vpop.f32.mrb[3].mxu0 }
 0x115 PF: > { %v1756_v56 = vld [vmem:[%s2483_s10] ss:$0 sm:$0xff]  ;;  %vm1023_vm12 = vcmask 261120   ;;  %v1984_v58 = vmov 0   ;;  %v1029_v61 = vlaneseq  ;;  %v1027_v3 = vld [vmem:[#allocation5] sm:$0xff]  ;;  %vm1061_vm13 = vcmask 64512  }
 0x116   : > { %1929 = vset.pattern.permute.xlu0 %v1984_v58  ;;  %v1757_v60 = vld [vmem:[#allocation8] ss:$0 sm:$0xff]  ;;  %v1985_v39 = vmov 0.0   ;;  %v1931_v42 = vld [vmem:[%s2487_s15 + $0x8] sm:$0xff]   ;;  %vm1986_vm14 = vmmov 0   ;;  %s1001_s25 = sld [smem:[#allocation7 + %s2118_s13]] }
 0x117   : > { %v2273_v62 = vand.u32 127, %v1029_v61  ;;  %v2275_v63 = vshrl.u32 %v1029_v61, 7  ;;  %v1930_v38 = vld [vmem:[%s2487_s15] sm:$0xff]   ;;  %1845 = vmatprep.subr.bf16.mxu0 %v1985_v39  ;;  %1867 = vmatprep.subr.bf16.mxu1 %v1985_v39  ;;  %v1936_v47 = vld [vmem:[%s2489_s17 + $0x8] sm:$0xff]   ;;  %s2518_s24 = sld [smem:[#allocation13_spill]]  ;;  %s2519_s23 = sld [smem:[#allocation12_spill]] }
 0x118   : > { %1846 = vmatpush3.bf16.msra.mxu0 %v1930_v38  ;;  %1849 = vmatprep.mubr.msk.bf16.mxu0 %vm1986_vm14, %v1985_v39  ;;  %v1935_v46 = vld [vmem:[%s2489_s17] sm:$0xff]   ;;  %s2521_s28 = sld [smem:[#allocation18_spill]]  ;;  %vm1328_vm15 = vcmask 130048   ;;  %s1987_s4 = smov 64  }
 0x119   : > { %v1033_v0 = vsub.s32 %v2273_v62, %v2275_v63  ;;  %v1083_v25 = vsub.s32 0, %v2275_v63  ;;  %v1090_v29 = vsub.s32 1, %v2275_v63  ;;  %v1097_v31 = vsub.s32 2, %v2275_v63  ;;  %1847 = vmatprep.subr.bf16.mxu0 %v1985_v39  ;;  %1871 = vmatprep.mubr.msk.bf16.mxu1 %vm1986_vm14, %v1985_v39  ;;  %s1988_s16 = smov 32   ;;  %s1989_s27 = smov 96  }
 0x11a   : > { %v1104_v33 = vsub.s32 3, %v2275_v63  ;;  %v1111_v35 = vsub.s32 4, %v2275_v63  ;;  %v1118_v37 = vsub.s32 5, %v2275_v63  ;;  %v1125_v41 = vsub.s32 6, %v2275_v63  ;;  %1868 = vmatpush3.bf16.msra.mxu1 %v1935_v46 }
 0x11b   : > { %v2266_v55 = vld [vmem:[#allocation2] sm:$0xff]  ;;  %v1132_v44 = vsub.s32 7, %v2275_v63  ;;  %1869 = vmatprep.subr.bf16.mxu1 %v1985_v39  ;;  %vm1552_vm0 = vcmp.lt.s32.totalorder %v2273_v62, 12 }
 0x11c   : > { %v1022_v57 = vmul.f32 %v1756_v56, %v2266_v55  ;;  %1848 = vmatpush3.bf16.msra.mxu0 %v1931_v42  ;;  %v1373_v48 = vpack.c.bf16 %v2266_v55, %v2266_v55  ;;  %p1002_p12 = scmp.ne.s32.totalorder %s1001_s25, 0 }
 0x11d   : > { %1853 = vmatprep.subr.bf16.mxu0 %v1985_v39  ;;  %v1169_v52 = vld [vmem:[%s2518_s24 + $0x8] sm:$0xff]  ;;  %v1168_v53 = vld [vmem:[%s2518_s24] sm:$0xff]  ;;  %v1170_v54 = vld [vmem:[%s2518_s24 + $0x10] sm:$0xff] }
 0x11e   : > { %v1024_v59 = vsel %vm1023_vm12, %v1022_v57, 0.0  ;;  %1870 = vmatpush3.bf16.msra.mxu1 %v1936_v47  ;;  %v1171_v57 = vld [vmem:[%s2518_s24 + $0x18] sm:$0xff]  ;;  %v1172_v61 = vld [vmem:[%s2518_s24 + $0x20] sm:$0xff]  ;;  %p2352_p13 = por %p1002_p12, %p662_p10 }
 0x11f   : > { %1025 = vadd.xlane.f32.xlu0 %v1024_v59  ;;  %1883 = vmatprep.subr.bf16.mxu1 %v1985_v39 }
 0x120   : > { %s1004_s3 = scalar_select %p2352_p13, 1, 0 }
 0x121   : > { %1872 = vmatmul.mubr.msk.bf16.vlgmr.msra.gmra.mrb[0].mxu1 %vm1023_vm12, %v1373_v48 }
 0x122   : > { %1899 = vmatprep.mubr.msk.bf16.mxu1 %vm1986_vm14, %v1985_v39  ;;  %s1005_s6 = scvt.s32.f32 %s1004_s3 }
 0x124   : > { %s1009_s26 = ssub.f32 1.0, %s1005_s6 }
 0x135   : > { %1056 = vperm.xlu0 %1929, %v1757_v60   ;;  %v1138_v60 = vld [vmem:[%s2519_s23 + $0x8] sm:$0xff] }
 0x1ac   : > { %v1026_v1 = vpop.xlane.xlu0 %1025 }
 0x1ad   : > { %v1034_v2 = vrot.slane %v1026_v1, %v1033_v0  ;;  %v1137_v0 = vld [vmem:[%s2519_s23] sm:$0xff] }
 0x1af   : > { %v1048_v4 = vadd.f32 %v1034_v2, %v1027_v3  ;;  %v1139_v3 = vld [vmem:[%s2519_s23 + $0x10] sm:$0xff] }
 0x1b4   : > { %v1057_v5 = vpop.permute.xlu0 %1056 }
 0x1b5   : > { %v1059_v6 = vadd.f32 %v1057_v5, %v1048_v4  ;;  %v1173_v4 = vld [vmem:[%s2518_s24 + $0x28] sm:$0xff] }
 0x1b7   : > { %v1060_v7 = vmax.f32 %v1059_v6, 0.0 }
 0x1b9   : > { %v1062_v8 = vsel %vm1061_vm13, %v1060_v7, -inf }
 0x1ba   : > { %v1063_v9 = vrot.slane %v1062_v8, 4 }
 0x1bc   : > { %v1064_v10 = vmax.f32 %v1062_v8, %v1063_v9 }
 0x1be   : > { %v1065_v11 = vrot.slane %v1064_v10, 2 }
 0x1c0   : > { %v1066_v12 = vmax.f32 %v1064_v10, %v1065_v11  ;;  %v1140_v11 = vld [vmem:[%s2519_s23 + $0x18] sm:$0xff] }
 0x1c2   : > { %v1067_v13 = vrot.slane %v1066_v12, 1 }
 0x1c4   : > { %v1068_v14 = vmax.f32 %v1066_v12, %v1067_v13 }
 0x1c6   : > { %v1069_v15 = vsub.f32 %v1060_v7, %v1068_v14 }
 0x1c8   : > { %v1070_v16 = vmul.f32 1.442695, %v1069_v15 }
 0x1ca   : > { %1947 = vpow2.f32 %v1070_v16 }
 0x1d4   : > { %v1948_v17 = vpop.eup %1947 }
 0x1d5   : > { %v1072_v18 = vsel %vm1061_vm13, %v1948_v17, 0.0 }
 0x1d6   : > { %v1073_v19 = vrot.slane %v1072_v18, 4 }
 0x1d8   : > { %v1074_v20 = vadd.f32 %v1073_v19, %v1072_v18  ;;  %v1174_v18 = vld [vmem:[%s2518_s24 + $0x30] sm:$0xff] }
 0x1da   : > { %v1075_v21 = vrot.slane %v1074_v20, 2 }
 0x1dc   : > { %v1076_v22 = vadd.f32 %v1075_v21, %v1074_v20 }
 0x1de   : > { %v1077_v23 = vrot.slane %v1076_v22, 1 }
 0x1e0   : > { %v1078_v24 = vadd.f32 %v1077_v23, %v1076_v22 }
 0x1e2   : > { %1949 = vrcp.f32 %v1078_v24  ;;  %v1142_v24 = vld [vmem:[%s2519_s23 + $0x28] sm:$0xff] }
 0x1ec   : > { %v1950_v26 = vpop.eup %1949 }
 0x1ed   : > { %v1080_v27 = vmul.f32 %v1950_v26, %v1948_v17  ;;  %v1141_v17 = vld [vmem:[%s2519_s23 + $0x20] sm:$0xff] }
 0x1ef   : > { %v1084_v28 = vrot.slane %v1080_v27, %v1083_v25  ;;  %v1091_v30 = vrot.slane %v1080_v27, %v1090_v29  ;;  %v1098_v32 = vrot.slane %v1080_v27, %v1097_v31  ;;  %v1105_v34 = vrot.slane %v1080_v27, %v1104_v33  ;;  %v1175_v33 = vld [vmem:[%s2518_s24 + $0x38] sm:$0xff] }
 0x1f0   : > { %v1112_v36 = vrot.slane %v1080_v27, %v1111_v35  ;;  %v1119_v40 = vrot.slane %v1080_v27, %v1118_v37  ;;  %v1126_v43 = vrot.slane %v1080_v27, %v1125_v41  ;;  %v1133_v45 = vrot.slane %v1080_v27, %v1132_v44 }
 0x1f1   : > { %1086 = vbcast.lane.b32.xlu1 %v1084_v28, 256 }
 0x1f5   : > { %1093 = vbcast.lane.b32.xlu1 %v1091_v30, 256 }
 0x1f9   : > { %1100 = vbcast.lane.b32.xlu1 %v1098_v32, 256  ;;  %v1143_v32 = vld [vmem:[%s2519_s23 + $0x30] sm:$0xff] }
 0x1fd   : > { %1107 = vbcast.lane.b32.xlu1 %v1105_v34, 256 }
 0x201   : > { %1114 = vbcast.lane.b32.xlu1 %v1112_v36, 256 }
 0x205   : > { %1121 = vbcast.lane.b32.xlu1 %v1119_v40, 256  ;;  %v1144_v40 = vld [vmem:[%s2519_s23 + $0x38] sm:$0xff] }
 0x209   : > { %1128 = vbcast.lane.b32.xlu1 %v1126_v43, 256 }
 0x20d   : > { %1135 = vbcast.lane.b32.xlu1 %v1133_v45, 256 }
 0x263   : > { %v1087_v49 = vpop.permute.xlu1 %1086 }
 0x264   : > { %v1176_v58 = vmul.f32 %v1168_v53, %v1087_v49  ;;  %v1145_v9 = vmul.f32 %v1137_v0, %v1087_v49  ;;  %v1932_v53 = vld [vmem:[%s2486_s14] sm:$0xff]  }
 0x266   : > { %v1184_v5 = vsel %vm1023_vm12, %v1176_v58, 0.0  ;;  %v1153_v22 = vsel %vm1023_vm12, %v1145_v9, 0.0  ;;  %v1933_v58 = vld [vmem:[%s2486_s14 + $0x8] sm:$0xff]  }
 0x267   : > { %v1094_v50 = vpop.permute.xlu1 %1093 }
 0x268   : > { %v1177_v56 = vmul.f32 %v1169_v52, %v1094_v50  ;;  %v1146_v6 = vmul.f32 %v1138_v60, %v1094_v50  ;;  %v1007_v60 = vstv %s1005_s6 }
 0x26a   : > { %v1185_v1 = vsel %vm1023_vm12, %v1177_v56, 0.0  ;;  %v1154_v19 = vsel %vm1023_vm12, %v1146_v6, 0.0 }
 0x26b   : > { %v1101_v51 = vpop.permute.xlu1 %1100  ;;  %v1186_v10 = vadd.f32 %v1185_v1, %v1184_v5  ;;  %v1155_v30 = vadd.f32 %v1154_v19, %v1153_v22 }
 0x26c   : > { %v1178_v59 = vmul.f32 %v1170_v54, %v1101_v51  ;;  %v1147_v13 = vmul.f32 %v1139_v3, %v1101_v51  ;;  %v1934_v3 = vld [vmem:[%s2521_s28] sm:$0xff]  }
 0x26e   : > { %v1187_v7 = vsel %vm1023_vm12, %v1178_v59, 0.0  ;;  %v1156_v26 = vsel %vm1023_vm12, %v1147_v13, 0.0  ;;  %v1006_v59 = vld [vmem:[%s2130_s2] sm:$0xff] }
 0x26f   : > { %v1108_v55 = vpop.permute.xlu1 %1107  ;;  %v1188_v16 = vadd.f32 %v1187_v7, %v1186_v10  ;;  %v1157_v37 = vadd.f32 %v1156_v26, %v1155_v30  ;;  %v1008_v1 = vmul.f32 %v1007_v60, %v1006_v59  ;;  %v1427_v7 = vpop.f32.mrb[0].mxu1  ;;  %v1939_v60 = vld [vmem:[%s2493_s21] sm:$0xff]  }
 0x270   : > { %v1179_v2 = vmul.f32 %v1171_v57, %v1108_v55  ;;  %v1148_v20 = vmul.f32 %v1140_v11, %v1108_v55  ;;  %1884 = vmatpush3.bf16.msra.mxu1 %v1939_v60 }
 0x271   : > { %1885 = vmatprep.subr.bf16.mxu1 %v1985_v39 }
 0x272   : > { %v1189_v14 = vsel %vm1023_vm12, %v1179_v2, 0.0  ;;  %v1158_v34 = vsel %vm1023_vm12, %v1148_v20, 0.0 }
 0x273   : > { %v1115_v63 = vpop.permute.xlu1 %1114  ;;  %v1190_v23 = vadd.f32 %v1189_v14, %v1188_v16  ;;  %v1159_v45 = vadd.f32 %v1158_v34, %v1157_v37 }
 0x274   : > { %v1180_v8 = vmul.f32 %v1172_v61, %v1115_v63  ;;  %v1149_v27 = vmul.f32 %v1141_v17, %v1115_v63  ;;  %v1010_v61 = vld [vmem:[#allocation4] sm:$0xff]  ;;  %v1011_v63 = vstv %s1009_s26 }
 0x275   : > { %v1012_v2 = vmul.f32 %v1011_v63, %v1010_v61  ;;  %v1940_v61 = vld [vmem:[%s2493_s21 + $0x8] sm:$0xff]   ;;  %v1941_v63 = vld [vmem:[%s2493_s21 + $0x10] sm:$0xff]  }
 0x276   : > { %v1191_v21 = vsel %vm1023_vm12, %v1180_v8, 0.0  ;;  %v1160_v42 = vsel %vm1023_vm12, %v1149_v27, 0.0  ;;  %v1873_v8 = vpop.f32.mrb[1].mxu1  ;;  %1886 = vmatpush3.bf16.msra.mxu1 %v1940_v61 }
 0x277   : > { %v1122_v12 = vpop.permute.xlu1 %1121  ;;  %v1192_v31 = vadd.f32 %v1191_v21, %v1190_v23  ;;  %v1161_v50 = vadd.f32 %v1160_v42, %v1159_v45  ;;  %v1013_v5 = vadd.f32 %v1012_v2, %v1008_v1  ;;  %v1430_v9 = vpop.f32.mrb[2].mxu1  ;;  %v1769_v23 = vld [vmem:[%s2490_s18] ss:$0 sm:$0xff]  ;;  %v1938_v42 = vld [vmem:[%s2491_s19 + $0x8] sm:$0xff]   ;;  %1887 = vmatprep.subr.bf16.mxu1 %v1985_v39  ;;  %v1946_v8 = vld [vmem:[%s2493_s21 + $0x38] sm:$0xff]  }
 0x278   : > { %v1181_v15 = vmul.f32 %v1173_v4, %v1122_v12  ;;  %v1150_v35 = vmul.f32 %v1142_v24, %v1122_v12  ;;  %v1874_v10 = vpop.f32.mrb[3].mxu1  ;;  %v1943_v1 = vld [vmem:[%s2493_s21 + $0x20] sm:$0xff]   ;;  %v1944_v2 = vld [vmem:[%s2493_s21 + $0x28] sm:$0xff]  }
 0x279   : > { %v1319_v6 = vpack.c.bf16 %v1013_v5, %v1013_v5 }
 0x27a   : > { %v1193_v28 = vsel %vm1023_vm12, %v1181_v15, 0.0  ;;  %v1162_v47 = vsel %vm1023_vm12, %v1150_v35, 0.0  ;;  %1888 = vmatpush3.bf16.msra.mxu1 %v1941_v63 }
 0x27b   : > { %v1129_v25 = vpop.permute.xlu1 %1128  ;;  %v1194_v38 = vadd.f32 %v1193_v28, %v1192_v31  ;;  %v1163_v54 = vadd.f32 %v1162_v47, %v1161_v50  ;;  %1889 = vmatprep.subr.bf16.mxu1 %v1985_v39 }
 0x27c   : > { %v1182_v29 = vmul.f32 %v1174_v18, %v1129_v25  ;;  %v1151_v43 = vmul.f32 %v1143_v32, %v1129_v25 }
 0x27e   : > { %v1195_v36 = vsel %vm1023_vm12, %v1182_v29, 0.0  ;;  %v1164_v52 = vsel %vm1023_vm12, %v1151_v43, 0.0  ;;  %v1449_v29 = vld [vmem:[#allocation3] sm:$0xff] }
 0x27f   : > { %v1136_v41 = vpop.permute.xlu1 %1135  ;;  %v1196_v46 = vadd.f32 %v1195_v36, %v1194_v38  ;;  %v1165_v57 = vadd.f32 %v1164_v52, %v1163_v54 }
 0x280   : > { %v1183_v44 = vmul.f32 %v1175_v33, %v1136_v41  ;;  %v1152_v48 = vmul.f32 %v1144_v40, %v1136_v41  ;;  %v1937_v41 = vld [vmem:[%s2491_s19] sm:$0xff]  }
 0x282   : > { %v1197_v49 = vsel %vm1023_vm12, %v1183_v44, 0.0  ;;  %v1166_v56 = vsel %vm1023_vm12, %v1152_v48, 0.0  ;;  %v1771_v48 = vld [vmem:[%s2492_s20] ss:$0 sm:$0xff] }
 0x283   : > { %v1198_v51 = vadd.f32 %v1197_v49, %v1196_v46  ;;  %v1167_v0 = vadd.f32 %v1166_v56, %v1165_v57 }
 0x285   : > { %v1204_v55 = vpack.c.bf16 %v1198_v51, %v1198_v51  ;;  %v1199_v4 = vpack.c.bf16 %v1167_v0, %v1167_v0  ;;  %v1942_v0 = vld [vmem:[%s2493_s21 + $0x18] sm:$0xff]  }
 0x286   : > { %1890 = vmatpush3.bf16.msra.mxu1 %v1942_v0 }
 0x287   : > { %1850 = vmatmul.mubr.msk.bf16.vlgmr.msra.gmra.mrb[0].mxu0 %vm1023_vm12, %v1204_v55  ;;  %1891 = vmatprep.subr.bf16.mxu1 %v1985_v39 }
 0x288   : > { %1854 = vmatpush3.bf16.msra.mxu0 %v1932_v53  ;;  %1857 = vmatprep.mubr.msk.bf16.mxu0 %vm1986_vm14, %v1985_v39 }
 0x289   : > { %1855 = vmatprep.subr.bf16.mxu0 %v1985_v39 }
 0x28a   : > { %1892 = vmatpush3.bf16.msra.mxu1 %v1943_v1 }
 0x28b   : > { %1893 = vmatprep.subr.bf16.mxu1 %v1985_v39 }
 0x28c   : > { %1856 = vmatpush3.bf16.msra.mxu0 %v1933_v58 }
 0x28d   : > { %1861 = vmatprep.subr.bf16.mxu0 %v1985_v39 }
 0x28e   : > { %1894 = vmatpush3.bf16.msra.mxu1 %v1944_v2 }
 0x28f   : > { %1858 = vmatmul.mubr.msk.bf16.vlgmr.msra.gmra.mrb[4].mxu0 %vm1023_vm12, %v1199_v4  ;;  %1895 = vmatprep.subr.bf16.mxu1 %v1985_v39 }
 0x290   : > { %1862 = vmatpush3.bf16.msra.mxu0 %v1934_v3  ;;  %1863 = vmatprep.mubr.msk.bf16.mxu0 %vm1986_vm14, %v1985_v39  ;;  %v1945_v3 = vld [vmem:[%s2493_s21 + $0x30] sm:$0xff]  }
 0x291   : > { %1875 = vmatprep.subr.bf16.mxu0 %v1985_v39 }
 0x292   : > { %1896 = vmatpush3.bf16.msra.mxu1 %v1945_v3 }
 0x293   : > { %1897 = vmatprep.subr.bf16.mxu1 %v1985_v39 }
 0x296   : > { %1898 = vmatpush3.bf16.msra.mxu1 %v1946_v8 }
 0x297   : > { %1864 = vmatmul.mubr.msk.bf16.vlgmr.msra.gmra.mrb[8].mxu0 %vm1328_vm15, %v1319_v6 }
 0x298   : > { %1879 = vmatprep.mubr.msk.bf16.mxu0 %vm1986_vm14, %v1985_v39  ;;  %1876 = vmatpush3.bf16.msra.mxu0 %v1937_v41 }
 0x299   : > { %1877 = vmatprep.subr.bf16.mxu0 %v1985_v39 }
 0x29c   : > { %1878 = vmatpush3.bf16.msra.mxu0 %v1938_v42 }
 0x35a   : > { %v1258_v11 = vpop.f32.mrb[0].mxu0 }
 0x35b   : > { %v1851_v12 = vpop.f32.mrb[1].mxu0 }
 0x35c   : > { %v1261_v13 = vpop.f32.mrb[2].mxu0 }
 0x35d   : > { %v1852_v14 = vpop.f32.mrb[3].mxu0 }
 0x35e   : > { %v1990_v14 = vmov 1.0|1.0  }
 0x362   : > { %v1313_v15 = vpop.f32.mrb[4].mxu0 }
 0x363   : > { %v1314_v16 = vadd.f32 %v1313_v15, %v1258_v11  ;;  %v1859_v17 = vpop.f32.mrb[5].mxu0 }
 0x364   : > { %v1316_v18 = vpop.f32.mrb[6].mxu0 }
 0x365   : > { %v1860_v19 = vpop.f32.mrb[7].mxu0 }
 0x36a   : > { %v1366_v20 = vpop.f32.mrb[8].mxu0 }
 0x36b   : > { %v1372_v21 = vadd.f32 %v1366_v20, %v1314_v16  ;;  %v1865_v22 = vpop.f32.mrb[9].mxu0 }
 0x36c   : > { %v1369_v24 = vpop.f32.mrb[10].mxu0 }
 0x36d   : > { %v1433_v25 = vadd.f32 %v1427_v7, %v1372_v21  ;;  %v1866_v26 = vpop.f32.mrb[11].mxu0 }
 0x36f   : > { %v1441_v27 = vadd.f32 %v1769_v23, %v1433_v25 }
 0x371   : > { %1951 = vtanh.f32 %v1441_v27  ;;  %v1770_v30 = vmul.f32 -1.442695, %v1441_v27 }
 0x373   : > { %1953 = vpow2.f32 %v1770_v30 }
 0x37b   : > { %v1952_v28 = vpop.eup %1951 }
 0x37c   : > { %1456 = vrot.lane.b32.xlu1 %v1952_v28, %s1987_s4 }
 0x37d   : > { %v1954_v31 = vpop.eup %1953 }
 0x37e   : > { %v1445_v32 = vadd.f32 1.0, %v1954_v31 }
 0x380   : > { %1451 = vrot.lane.b32.xlu1 %v1449_v29, %s1988_s16  ;;  %1955 = vrcp.f32 %v1445_v32 }
 0x38a   : > { %v1956_v33 = vpop.eup %1955 }
 0x3ee   : > { %v1457_v34 = vpop.permute.xlu1 %1456 }
 0x3ef   : > { %v1459_v35 = vmul.f32 %v1956_v33, %v1457_v34 }
 0x3f1   : > { %1461 = vrot.lane.b32.xlu1 %v1459_v35, %s1988_s16 }
 0x3f2   : > { %v1452_v36 = vpop.permute.xlu1 %1451 }
 0x3f3   : > { %v1454_v37 = vmul.f32 %v1956_v33, %v1452_v36 }
 0x463   : > { %v1462_v38 = vpop.permute.xlu1 %1461 }
 0x464   : > { %v2415_v40 = vadd.f32 %v1462_v38, %v1454_v37 }
 0x466   : > { %1957 = vtanh.f32 %v2415_v40 }
 0x470   : > { %v1958_v43 = vpop.eup %1957 }
 0x471   : > { %1467 = vrot.lane.b32.xlu1 %v1958_v43, %s1987_s4 }
 0x4e3   : > { %v1468_v44 = vpop.permute.xlu1 %1467 }
 0x4e4   : > { %v1470_v45 = vmul.f32 %v1956_v33, %v1468_v44 }
 0x4e6   : > { %v1481_v46 = vpack.c.bf16 %v1470_v45, %v1470_v45 }
 0x4e8   : > { %1494 = vrot.lane.b32.xlu0 %v1481_v46, %s1988_s16 }
 0x55a   : > { %v1495_v47 = vpop.permute.xlu0 %1494 }
 0x55b   : > { %1880 = vmatmul.mubr.msk.bf16.vlgmr.msra.gmra.mrb[12].mxu0 %vm1023_vm12, %v1495_v47 }
 0x62e   : > { %v1545_v49 = vpop.f32.mrb[12].mxu0 }
 0x62f   : > { %v1546_v50 = vadd.f32 %v1771_v48, %v1545_v49  ;;  %v1881_v51 = vpop.f32.mrb[13].mxu0 }
 0x630   : > { %v1548_v52 = vpop.f32.mrb[14].mxu0 }
 0x631   : > { %1551 = vst [vmem:[%s2135_s29] sm:$0xff] %v1546_v50  ;;  %v1882_v53 = vpop.f32.mrb[15].mxu0  ;;  %v1553_v54 = vsel %vm1552_vm0, %v1546_v50, -inf }
 0x632   : > { %1554 = vmax.xlane.f32.xlu1 %v1553_v54 }
 0x643   : > { %1472 = vrot.lane.b32.xlu1 %v1470_v45, %s1988_s16 }
 0x6bf   : > { %v1555_v55 = vpop.xlane.xlu1 %1554 }
 0x6c0   : > { %vm1556_vm1 = vcmp.eq.f32.partialorder %v1553_v54, %v1555_v55 }
 0x6c1   : > { %v1557_v56 = vsel %vm1556_vm1, %v2273_v62, 128 }
 0x6c2   : > { %v1559_v57 = vshra.s32 %v1557_v56, 16  ;;  %v1558_v4 = vand.u32 65535, %v1557_v56 }
 0x6c3   : > { %v1473_v58 = vpop.permute.xlu1 %1472 }
 0x6c4   : > { %1475 = vst.msk [vmem:[#allocation2] sm:$0xff] %vm1023_vm12, %v1473_v58  ;;  %v1561_v59 = vcvt.s32.f32 %v1559_v57  ;;  %v1560_v6 = vcvt.s32.f32 %v1558_v4 }
 0x6c6   : > { %1562 = vmin.xlane.f32.xlu0 %v1561_v59 }
 0x753   : > { %v1563_v5 = vpop.xlane.xlu0 %1562 }
 0x754   : > { %vm1564_vm2 = vcmp.eq.f32.partialorder %v1561_v59, %v1563_v5  ;;  %v1569_v9 = vcvt.f32.s32 %v1563_v5 }
 0x755   : > { %v1565_v7 = vsel %vm1564_vm2, %v1560_v6, inf }
 0x756   : > { %1566 = vmin.xlane.f32.xlu0 %v1565_v7  ;;  %v1570_v11 = vshll.u32 %v1569_v9, 16 }
 0x76c   : > { %1477 = vrot.lane.b32.xlu0 %v2415_v40, %s1989_s27 }
 0x7e3   : > { %v1567_v10 = vpop.xlane.xlu0 %1566 }
 0x7e4   : > { %v1568_v12 = vcvt.f32.s32 %v1567_v10 }
 0x7e6   : > { %v1571_v13 = vadd.s32 %v1570_v11, %v1568_v12 }
 0x7e7   : > { %v1478_v39 = vpop.permute.xlu0 %1477 }
 0x7e8   : > { %vm1572_vm3 = vcmp.eq.s32.totalorder %v2273_v62, %v1571_v13  ;;  %1480 = vst.msk [vmem:[#allocation3] sm:$0xff] %vm1023_vm12, %v1478_v39 }
 0x7e9   : > { %vm1784_vm4 = vmpackc.low %vm1572_vm3, %vm1572_vm3 }
 0x7ea   : > { %1900 = vmatmul.mubr.msk.bf16.vlgmr.msra.gmra.mrb[4].mxu1 %vm1784_vm4, %v1990_v14 }
 0x8bd   : > { %v1674_v15 = vpop.f32.mrb[4].mxu1 }
 0x8be   : > { %1680 = vst.msk [vmem:[#allocation4] sm:$0xff] %vm1328_vm15, %v1674_v15  ;;  %v1901_v16 = vpop.f32.mrb[5].mxu1 }
 0x8bf   : > { %v1677_v17 = vpop.f32.mrb[6].mxu1 }
 0x8c0   : > { %v1902_v18 = vpop.f32.mrb[7].mxu1 }
 0x8c1 PF: > { %s40_s1 = sadd.s32 1, %s1979_s1  }
 0x8c2   : > { %p37_p0 = scmp.ge.s32.totalorder %s40_s1, 7  }
 0x8c4   :  { %39 = sbr.rel (!%p37_p0) target bundleno = 24 (0x18), region = 138 }

</bundles_post_ra>
